<compile_context>
chip_gen: v6e
topology: v6e:2x2x1
jax: 0.10.0
libtpu: 0.0.40
codegen_flags: <defaults>
</compile_context>

<pallas_src>
import functools

import jax
import jax.numpy as jnp
import numpy as np
from jax import lax
from jax.experimental import pallas as pl
from jax.experimental.pallas import tpu as pltpu


def attention_kernel(xkv_ref, wq_ref, wk_ref, wv_ref, bqkv_ref, wp_ref, bp_ref,
                     o_ref,
                     q_scr, k_scr, v_scr, acc_scr,
                     *, num_heads, head_dim, mxu_dtype, approx_reciprocal,
                     unroll_heads):
    """One (batch element, query tile) per grid step.

    xkv_ref : (N, C)       full sequence for this batch element
    wq_ref  : (C, AH)      Q weight, 1/sqrt(hd) pre-folded   (mxu dtype)
    wk_ref  : (C, AH)      K weight                          (mxu dtype)
    wv_ref  : (C, AH)      V weight                          (mxu dtype)
    bqkv_ref: (3, AH)      rows: scaled q bias, k bias, v bias (f32)
    wp_ref  : (H, hd, C)   output-projection weight, per-head view (mxu dtype)
    bp_ref  : (1, C)       output-projection bias (f32)
    o_ref   : (tq, C)
    q_scr   : (H, tq, hd)  per-head Q slabs (mxu dtype)
    k_scr   : (H, N, hd)   per-head K slabs, persistent across q tiles
    v_scr   : (H, N, hd)   per-head V slabs, persistent across q tiles
    acc_scr : (tq, C)      f32 output-projection accumulator
    """
    f32 = jnp.float32
    H, hd = num_heads, head_dim
    tq, C = o_ref.shape
    qi = pl.program_id(1)

    nt_dims = (((1,), (1,)), ((), ()))  # contract last dims: q @ k^T

    # (Re)compute K / V for this batch element once, on the first query tile.
    # Scratch persists across the (arbitrary) q-tile grid axis.
    @pl.when(qi == 0)
    def _():
        xkv = xkv_ref[...].astype(mxu_dtype)                              # (N, C)
        k_all = (jnp.dot(xkv, wk_ref[...], preferred_element_type=f32)
                 + bqkv_ref[1:2, :])                                      # (N, AH)
        v_all = (jnp.dot(xkv, wv_ref[...], preferred_element_type=f32)
                 + bqkv_ref[2:3, :])                                      # (N, AH)
        for h in range(H):  # static scatter into per-head slabs (stores only)
            k_scr[h] = k_all[:, h * hd:(h + 1) * hd].astype(k_scr.dtype)
            v_scr[h] = v_all[:, h * hd:(h + 1) * hd].astype(v_scr.dtype)

    # Wide Q projection for this query tile (scale & bias pre-folded).
    q_start = pl.multiple_of(qi * tq, tq)
    xq = xkv_ref[pl.ds(q_start, tq), :].astype(mxu_dtype)                 # (tq, C)
    q_all = (jnp.dot(xq, wq_ref[...], preferred_element_type=f32)
             + bqkv_ref[0:1, :])                                          # (tq, AH)
    for h in range(H):
        q_scr[h] = q_all[:, h * hd:(h + 1) * hd].astype(q_scr.dtype)

    acc_scr[...] = jnp.zeros_like(acc_scr)

    def head_body(h, carry):
        q_h = q_scr[h]                                                    # (tq, hd)
        k_h = k_scr[h]                                                    # (N,  hd)
        v_h = v_scr[h]                                                    # (N,  hd)
        s = lax.dot_general(q_h, k_h, nt_dims, preferred_element_type=f32)  # (tq, N)
        s = s - jnp.max(s, axis=-1, keepdims=True)
        p = jnp.exp(s)                                                    # f32 softmax math
        denom = jnp.sum(p, axis=-1, keepdims=True)                        # (tq, 1)
        ctx = jnp.dot(p.astype(mxu_dtype), v_h, preferred_element_type=f32)  # (tq, hd)
        # Deferred normalization: scale the (tq, hd) context instead of
        # dividing the (tq, N) probability tile.
        ctx = ctx * pl.reciprocal(denom, approx=approx_reciprocal)
        acc_scr[...] += jnp.dot(ctx.astype(mxu_dtype), wp_ref[h],
                                preferred_element_type=f32)               # (tq, C)
        return carry

    lax.fori_loop(0, H, head_body, 0, unroll=unroll_heads)

    o_ref[...] = (acc_scr[...] + bp_ref[...]).astype(o_ref.dtype)


def prepare_attention_params(w_qkv, b_qkv, w_proj, b_proj, *,
                             num_heads, head_dim, qk_scale=None):
    """One-time re-layout of the nn.Linear parameters.

    w_qkv : (C, 3*AH)  pre-transposed nn.Linear weight (y = x @ w + b)
    b_qkv : (3*AH,)
    w_proj: (AH, C)
    b_proj: (C,)
    """
    C = w_qkv.shape[0]
    AH = num_heads * head_dim
    scale = head_dim ** (-0.5) if qk_scale is None else qk_scale
    b = jnp.reshape(b_qkv, (3, AH))
    bias_scale = jnp.array([scale, 1.0, 1.0], dtype=b.dtype)[:, None]
    return dict(
        w_q=w_qkv[:, 0:AH] * scale,                      # scale folded into Q
        w_k=w_qkv[:, AH:2 * AH],
        w_v=w_qkv[:, 2 * AH:3 * AH],
        w_p=jnp.reshape(w_proj, (num_heads, head_dim, C)),
        b_qkv=b * bias_scale,                            # (3, AH): q*scale, k, v
        b_p=jnp.reshape(b_proj, (1, C)),
    )


def _pick_q_tile(N, C, q_tile):
    if q_tile is not None:
        assert N % q_tile == 0, "q_tile must divide N"
        assert q_tile == N or q_tile % 8 == 0, "q_tile must be a multiple of 8"
        return q_tile
    # Sub-sequence q tiles need C % 128 == 0 for the (tq, C) output block.
    if N <= 256 or C % 128 != 0:
        return N
    for t in (256, 128, 64, 32, 16, 8):
        if N % t == 0:
            return t
    return N


def _padded_bytes(shape, dtype):
    shape = tuple(shape)
    if len(shape) == 1:
        shape = (1,) + shape
    lead = int(np.prod(shape[:-2])) if len(shape) > 2 else 1
    s_p = -(-shape[-2] // 8) * 8
    l_p = -(-shape[-1] // 128) * 128
    return lead * s_p * l_p * jnp.dtype(dtype).itemsize


def _attention_pallas(x, params, *, num_heads, head_dim, q_tile, use_bf16_mxu,
                      approx_reciprocal, single_buffer_weights):
    B, N, C = x.shape
    H, hd = num_heads, head_dim
    AH = H * hd
    tq = _pick_q_tile(N, C, q_tile)
    n_q = N // tq
    f32 = jnp.float32

    mxu_dtype = jnp.bfloat16 if (x.dtype == jnp.bfloat16 or use_bf16_mxu) else f32

    # Matmul operands in the MXU dtype (halves weight DMA/VMEM for bf16).
    w_q = params["w_q"].astype(mxu_dtype)
    w_k = params["w_k"].astype(mxu_dtype)
    w_v = params["w_v"].astype(mxu_dtype)
    w_p = params["w_p"].astype(mxu_dtype)
    b_qkv = params["b_qkv"].astype(f32)
    b_p = params["b_p"].astype(f32)

    def const_spec(shape):
        ndim = len(shape)
        index_map = lambda b, i: (0,) * ndim
        if single_buffer_weights:
            # Grid-invariant blocks: single-buffer to save weight VMEM.
            return pl.BlockSpec(shape, index_map, pipeline_mode=pl.Buffered(1))
        return pl.BlockSpec(shape, index_map)

    in_specs = [
        pl.BlockSpec((None, N, C), lambda b, i: (b, 0, 0)),  # x, full sequence
        const_spec((C, AH)),                                 # w_q (scaled)
        const_spec((C, AH)),                                 # w_k
        const_spec((C, AH)),                                 # w_v
        const_spec((3, AH)),                                 # b_qkv (q*s, k, v)
        const_spec((H, hd, C)),                              # w_p
        const_spec((1, C)),                                  # b_p
    ]
    out_specs = pl.BlockSpec((None, tq, C), lambda b, i: (b, i, 0))

    scratch_shapes = [
        pltpu.VMEM((H, tq, hd), mxu_dtype),   # q_scr
        pltpu.VMEM((H, N, hd), mxu_dtype),    # k_scr (persists across q tiles)
        pltpu.VMEM((H, N, hd), mxu_dtype),    # v_scr (persists across q tiles)
        pltpu.VMEM((tq, C), f32),             # acc_scr
    ]

    # VMEM budget from actual padded block sizes; cap at 48 MiB for v7x.
    wmul = 1 if single_buffer_weights else 2
    weight_bytes = (3 * _padded_bytes((C, AH), mxu_dtype)
                    + _padded_bytes((H, hd, C), mxu_dtype)
                    + _padded_bytes((3, AH), f32)
                    + _padded_bytes((1, C), f32))
    scratch_bytes = (_padded_bytes((H, tq, hd), mxu_dtype)
                     + 2 * _padded_bytes((H, N, hd), mxu_dtype)
                     + _padded_bytes((tq, C), f32))
    temp_bytes = 6 * _padded_bytes((tq, N), f32) + 2 * _padded_bytes((N, AH), f32)
    est = (2 * _padded_bytes((N, C), x.dtype)        # x block (double-buffered)
           + 2 * _padded_bytes((tq, C), x.dtype)     # out block
           + wmul * weight_bytes + scratch_bytes + temp_bytes)
    vmem_limit = int(min(max(est + (4 << 20), 32 << 20), 48 << 20))

    itemsize = jnp.dtype(x.dtype).itemsize
    w_itemsize = jnp.dtype(mxu_dtype).itemsize
    flops = B * (2 * N * C * 3 * AH        # Q, K, V projections (once per batch)
                 + 4 * N * N * AH          # q @ k^T and p @ v
                 + 2 * N * AH * C)         # output projection
    transcendentals = B * H * N * (N + 1)  # exp + reciprocal
    bytes_accessed = (2 * B * N * C * itemsize                   # x in, out
                      + (3 * C * AH + AH * C) * w_itemsize       # weights
                      + (3 * AH + C) * 4)                        # biases

    kernel = functools.partial(
        attention_kernel, num_heads=H, head_dim=hd, mxu_dtype=mxu_dtype,
        approx_reciprocal=approx_reciprocal, unroll_heads=(H <= 8))

    return pl.pallas_call(
        kernel,
        out_shape=jax.ShapeDtypeStruct((B, N, C), x.dtype),
        grid_spec=pltpu.PrefetchScalarGridSpec(
            num_scalar_prefetch=0,
            grid=(B, n_q),
            in_specs=in_specs,
            out_specs=out_specs,
            scratch_shapes=scratch_shapes),
        compiler_params=pltpu.CompilerParams(
            # q-tile axis must stay sequential per core ("arbitrary") so the
            # persistent K/V scratch + pl.when(qi == 0) recompute is correct.
            dimension_semantics=("parallel", "arbitrary"),
            vmem_limit_bytes=vmem_limit),
        cost_estimate=pl.CostEstimate(
            flops=int(flops),
            transcendentals=int(transcendentals),
            bytes_accessed=int(bytes_accessed)),
    )(x, w_q, w_k, w_v, b_qkv, w_p, b_p)


def attention_forward(x, params, *, num_heads, head_dim, q_tile=None,
                      use_bf16_mxu=False, approx_reciprocal=False):
    """BEiT Attention forward.  `params` comes from prepare_attention_params."""
    call = functools.partial(
        _attention_pallas, x, params, num_heads=num_heads, head_dim=head_dim,
        q_tile=q_tile, use_bf16_mxu=use_bf16_mxu,
        approx_reciprocal=approx_reciprocal)
    try:
        return call(single_buffer_weights=True)
    except Exception as first_err:  # noqa: BLE001
        # Only a pipeline_mode=pl.Buffered(1) rejection should land here.  If
        # the retry (default double buffering) also fails, the error is
        # genuine, so re-raise the ORIGINAL exception instead of masking it.
        try:
            return call(single_buffer_weights=False)
        except Exception:  # noqa: BLE001
            raise first_err


def attention_reference(x, w_qkv, b_qkv, w_proj, b_proj, *, num_heads, head_dim):
    """Pure-JAX reference mirroring the PyTorch forward."""
    B, N, C = x.shape
    AH = num_heads * head_dim
    scale = head_dim ** (-0.5)
    qkv = x @ w_qkv + jnp.reshape(b_qkv, (3 * AH,))
    qkv = qkv.reshape(B, N, 3, num_heads, head_dim).transpose(2, 0, 3, 1, 4)
    q, k, v = qkv[0] * scale, qkv[1], qkv[2]              # (B, H, N, hd)
    attn = q @ jnp.swapaxes(k, -2, -1)
    attn = jax.nn.softmax(attn, axis=-1)
    out = (attn @ v).transpose(0, 2, 1, 3).reshape(B, N, AH)
    return out @ w_proj + jnp.reshape(b_proj, (C,))


if __name__ == "__main__":
    # Small shapes consistent with the module: dim=C=32, num_heads=4 -> head_dim=8
    B, N, C = 2, 8, 32
    num_heads = 4
    head_dim = C // num_heads
    AH = num_heads * head_dim

    key = jax.random.PRNGKey(0)
    kx, kw1, kb1, kw2, kb2 = jax.random.split(key, 5)

    x = jax.random.normal(kx, (B, N, C), dtype=jnp.float32)
    # nn.Linear weights, stored pre-transposed as (in, out); deterministic init.
    w_qkv = jax.random.normal(kw1, (C, 3 * AH), dtype=jnp.float32) * 0.05
    b_qkv = jax.random.normal(kb1, (3 * AH,), dtype=jnp.float32) * 0.05
    w_proj = jax.random.normal(kw2, (AH, C), dtype=jnp.float32) * 0.05
    b_proj = jax.random.normal(kb2, (C,), dtype=jnp.float32) * 0.05

    params = prepare_attention_params(w_qkv, b_qkv, w_proj, b_proj,
                                      num_heads=num_heads, head_dim=head_dim)

    ref = attention_reference(x, w_qkv, b_qkv, w_proj, b_proj,
                              num_heads=num_heads, head_dim=head_dim)
    ref = jax.block_until_ready(ref)

    # Exact (f32 MXU) path.
    out = attention_forward(x, params, num_heads=num_heads, head_dim=head_dim)
    out = jax.block_until_ready(out)
    assert out.shape == (B, N, C)
    np.testing.assert_allclose(np.asarray(out), np.asarray(ref),
                               rtol=1e-4, atol=1e-5)

    # bf16-MXU fast path (f32 inputs, bf16 operands, f32 accumulation).
    out_fast = attention_forward(x, params, num_heads=num_heads,
                                 head_dim=head_dim, use_bf16_mxu=True,
                                 approx_reciprocal=True)
    out_fast = jax.block_until_ready(out_fast)
    np.testing.assert_allclose(np.asarray(out_fast), np.asarray(ref),
                               rtol=5e-2, atol=5e-2)

    print("KERNEL_OK")
</pallas_src>

<mosaic_0001>
module attributes {stable_mosaic.version = 11 : i64} {
  func.func @attention_kernel(%arg0: i32, %arg1: i32, %arg2: memref<1x8x32xf32, #tpu.memory_space<vmem>>, %arg3: memref<32x32xf32, #tpu.memory_space<vmem>>, %arg4: memref<32x32xf32, #tpu.memory_space<vmem>>, %arg5: memref<32x32xf32, #tpu.memory_space<vmem>>, %arg6: memref<3x32xf32, #tpu.memory_space<vmem>>, %arg7: memref<4x8x32xf32, #tpu.memory_space<vmem>>, %arg8: memref<1x32xf32, #tpu.memory_space<vmem>>, %arg9: memref<1x8x32xf32, #tpu.memory_space<vmem>>, %arg10: memref<4x8x8xf32, #tpu.memory_space<vmem>>, %arg11: memref<4x8x8xf32, #tpu.memory_space<vmem>>, %arg12: memref<4x8x8xf32, #tpu.memory_space<vmem>>, %arg13: memref<8x32xf32, #tpu.memory_space<vmem>>) attributes {dimension_semantics = [#tpu.dimension_semantics<parallel>, #tpu.dimension_semantics<arbitrary>], iteration_bounds = array<i64: 2, 1>, scalar_prefetch = 0 : i64, scratch_operands = 4 : i64, tpu.core_type = #tpu.core_type<tc>, window_params = [{transform_indices = @transform_0, window_bounds = array<i64: 1, 8, 32>}, {pipeline_mode = #tpu.pipeline_mode<synchronous>, transform_indices = @transform_1, window_bounds = array<i64: 32, 32>}, {pipeline_mode = #tpu.pipeline_mode<synchronous>, transform_indices = @transform_2, window_bounds = array<i64: 32, 32>}, {pipeline_mode = #tpu.pipeline_mode<synchronous>, transform_indices = @transform_3, window_bounds = array<i64: 32, 32>}, {pipeline_mode = #tpu.pipeline_mode<synchronous>, transform_indices = @transform_4, window_bounds = array<i64: 3, 32>}, {pipeline_mode = #tpu.pipeline_mode<synchronous>, transform_indices = @transform_5, window_bounds = array<i64: 4, 8, 32>}, {pipeline_mode = #tpu.pipeline_mode<synchronous>, transform_indices = @transform_6, window_bounds = array<i64: 1, 32>}, {transform_indices = @transform_7, window_bounds = array<i64: 1, 8, 32>}]} {
    %c0_i32 = arith.constant 0 : i32
    %0 = arith.cmpi eq, %arg1, %c0_i32 : i32
    %1 = arith.extui %0 : i1 to i32
    %c0_i32_0 = arith.constant 0 : i32
    %2 = arith.cmpi ne, %1, %c0_i32_0 : i32
    scf.if %2 {
      %c0_94 = arith.constant 0 : index
      %c0_95 = arith.constant 0 : index
      %c0_96 = arith.constant 0 : index
      %150 = vector.load %arg2[%c0_94, %c0_95, %c0_96] : memref<1x8x32xf32, #tpu.memory_space<vmem>>, vector<1x8x32xf32>
      %151 = vector.shape_cast %150 : vector<1x8x32xf32> to vector<8x32xf32>
      %c0_97 = arith.constant 0 : index
      %c0_98 = arith.constant 0 : index
      %152 = vector.load %arg4[%c0_97, %c0_98] : memref<32x32xf32, #tpu.memory_space<vmem>>, vector<32x32xf32>
      %cst_99 = arith.constant dense<0.000000e+00> : vector<8x32xf32>
      %153 = tpu.matmul %151, %152, %cst_99 {dimension_numbers = #tpu.dot_dimension_numbers<[1], [0], [0], [1], [0, 0, 1, 1], [], []>} : vector<8x32xf32>, vector<32x32xf32>, vector<8x32xf32> -> vector<8x32xf32>
      %c1_100 = arith.constant 1 : index
      %c0_101 = arith.constant 0 : index
      %154 = vector.load %arg6[%c1_100, %c0_101] : memref<3x32xf32, #tpu.memory_space<vmem>>, vector<1x32xf32>
      %155 = vector.broadcast %154 : vector<1x32xf32> to vector<8x32xf32>
      %156 = arith.addf %153, %155 : vector<8x32xf32>
      %c0_102 = arith.constant 0 : index
      %c0_103 = arith.constant 0 : index
      %157 = vector.load %arg5[%c0_102, %c0_103] : memref<32x32xf32, #tpu.memory_space<vmem>>, vector<32x32xf32>
      %cst_104 = arith.constant dense<0.000000e+00> : vector<8x32xf32>
      %158 = tpu.matmul %151, %157, %cst_104 {dimension_numbers = #tpu.dot_dimension_numbers<[1], [0], [0], [1], [0, 0, 1, 1], [], []>} : vector<8x32xf32>, vector<32x32xf32>, vector<8x32xf32> -> vector<8x32xf32>
      %c2_105 = arith.constant 2 : index
      %c0_106 = arith.constant 0 : index
      %159 = vector.load %arg6[%c2_105, %c0_106] : memref<3x32xf32, #tpu.memory_space<vmem>>, vector<1x32xf32>
      %160 = vector.broadcast %159 : vector<1x32xf32> to vector<8x32xf32>
      %161 = arith.addf %158, %160 : vector<8x32xf32>
      %162 = vector.extract_strided_slice %156 {offsets = [0, 0], sizes = [8, 8], strides = [1, 1]} : vector<8x32xf32> to vector<8x8xf32>
      %c0_107 = arith.constant 0 : index
      %c0_108 = arith.constant 0 : index
      %c0_109 = arith.constant 0 : index
      %163 = vector.load %arg11[%c0_107, %c0_108, %c0_109] : memref<4x8x8xf32, #tpu.memory_space<vmem>>, vector<1x8x8xf32>
      %164 = vector.shape_cast %163 : vector<1x8x8xf32> to vector<8x8xf32>
      %165 = vector.shape_cast %162 : vector<8x8xf32> to vector<1x8x8xf32>
      tpu.vector_store %arg11[%c0_107, %c0_108, %c0_109], %165 {strides = array<i32>} : memref<4x8x8xf32, #tpu.memory_space<vmem>>, vector<1x8x8xf32>,
      %166 = vector.extract_strided_slice %161 {offsets = [0, 0], sizes = [8, 8], strides = [1, 1]} : vector<8x32xf32> to vector<8x8xf32>
      %c0_110 = arith.constant 0 : index
      %c0_111 = arith.constant 0 : index
      %c0_112 = arith.constant 0 : index
      %167 = vector.load %arg12[%c0_110, %c0_111, %c0_112] : memref<4x8x8xf32, #tpu.memory_space<vmem>>, vector<1x8x8xf32>
      %168 = vector.shape_cast %167 : vector<1x8x8xf32> to vector<8x8xf32>
      %169 = vector.shape_cast %166 : vector<8x8xf32> to vector<1x8x8xf32>
      tpu.vector_store %arg12[%c0_110, %c0_111, %c0_112], %169 {strides = array<i32>} : memref<4x8x8xf32, #tpu.memory_space<vmem>>, vector<1x8x8xf32>,
      %170 = vector.extract_strided_slice %156 {offsets = [0, 8], sizes = [8, 8], strides = [1, 1]} : vector<8x32xf32> to vector<8x8xf32>
      %c1_113 = arith.constant 1 : index
      %c0_114 = arith.constant 0 : index
      %c0_115 = arith.constant 0 : index
      %171 = vector.load %arg11[%c1_113, %c0_114, %c0_115] : memref<4x8x8xf32, #tpu.memory_space<vmem>>, vector<1x8x8xf32>
      %172 = vector.shape_cast %171 : vector<1x8x8xf32> to vector<8x8xf32>
      %173 = vector.shape_cast %170 : vector<8x8xf32> to vector<1x8x8xf32>
      tpu.vector_store %arg11[%c1_113, %c0_114, %c0_115], %173 {strides = array<i32>} : memref<4x8x8xf32, #tpu.memory_space<vmem>>, vector<1x8x8xf32>,
      %174 = vector.extract_strided_slice %161 {offsets = [0, 8], sizes = [8, 8], strides = [1, 1]} : vector<8x32xf32> to vector<8x8xf32>
      %c1_116 = arith.constant 1 : index
      %c0_117 = arith.constant 0 : index
      %c0_118 = arith.constant 0 : index
      %175 = vector.load %arg12[%c1_116, %c0_117, %c0_118] : memref<4x8x8xf32, #tpu.memory_space<vmem>>, vector<1x8x8xf32>
      %176 = vector.shape_cast %175 : vector<1x8x8xf32> to vector<8x8xf32>
      %177 = vector.shape_cast %174 : vector<8x8xf32> to vector<1x8x8xf32>
      tpu.vector_store %arg12[%c1_116, %c0_117, %c0_118], %177 {strides = array<i32>} : memref<4x8x8xf32, #tpu.memory_space<vmem>>, vector<1x8x8xf32>,
      %178 = vector.extract_strided_slice %156 {offsets = [0, 16], sizes = [8, 8], strides = [1, 1]} : vector<8x32xf32> to vector<8x8xf32>
      %c2_119 = arith.constant 2 : index
      %c0_120 = arith.constant 0 : index
      %c0_121 = arith.constant 0 : index
      %179 = vector.load %arg11[%c2_119, %c0_120, %c0_121] : memref<4x8x8xf32, #tpu.memory_space<vmem>>, vector<1x8x8xf32>
      %180 = vector.shape_cast %179 : vector<1x8x8xf32> to vector<8x8xf32>
      %181 = vector.shape_cast %178 : vector<8x8xf32> to vector<1x8x8xf32>
      tpu.vector_store %arg11[%c2_119, %c0_120, %c0_121], %181 {strides = array<i32>} : memref<4x8x8xf32, #tpu.memory_space<vmem>>, vector<1x8x8xf32>,
      %182 = vector.extract_strided_slice %161 {offsets = [0, 16], sizes = [8, 8], strides = [1, 1]} : vector<8x32xf32> to vector<8x8xf32>
      %c2_122 = arith.constant 2 : index
      %c0_123 = arith.constant 0 : index
      %c0_124 = arith.constant 0 : index
      %183 = vector.load %arg12[%c2_122, %c0_123, %c0_124] : memref<4x8x8xf32, #tpu.memory_space<vmem>>, vector<1x8x8xf32>
      %184 = vector.shape_cast %183 : vector<1x8x8xf32> to vector<8x8xf32>
      %185 = vector.shape_cast %182 : vector<8x8xf32> to vector<1x8x8xf32>
      tpu.vector_store %arg12[%c2_122, %c0_123, %c0_124], %185 {strides = array<i32>} : memref<4x8x8xf32, #tpu.memory_space<vmem>>, vector<1x8x8xf32>,
      %186 = vector.extract_strided_slice %156 {offsets = [0, 24], sizes = [8, 8], strides = [1, 1]} : vector<8x32xf32> to vector<8x8xf32>
      %c3_125 = arith.constant 3 : index
      %c0_126 = arith.constant 0 : index
      %c0_127 = arith.constant 0 : index
      %187 = vector.load %arg11[%c3_125, %c0_126, %c0_127] : memref<4x8x8xf32, #tpu.memory_space<vmem>>, vector<1x8x8xf32>
      %188 = vector.shape_cast %187 : vector<1x8x8xf32> to vector<8x8xf32>
      %189 = vector.shape_cast %186 : vector<8x8xf32> to vector<1x8x8xf32>
      tpu.vector_store %arg11[%c3_125, %c0_126, %c0_127], %189 {strides = array<i32>} : memref<4x8x8xf32, #tpu.memory_space<vmem>>, vector<1x8x8xf32>,
      %190 = vector.extract_strided_slice %161 {offsets = [0, 24], sizes = [8, 8], strides = [1, 1]} : vector<8x32xf32> to vector<8x8xf32>
      %c3_128 = arith.constant 3 : index
      %c0_129 = arith.constant 0 : index
      %c0_130 = arith.constant 0 : index
      %191 = vector.load %arg12[%c3_128, %c0_129, %c0_130] : memref<4x8x8xf32, #tpu.memory_space<vmem>>, vector<1x8x8xf32>
      %192 = vector.shape_cast %191 : vector<1x8x8xf32> to vector<8x8xf32>
      %193 = vector.shape_cast %190 : vector<8x8xf32> to vector<1x8x8xf32>
      tpu.vector_store %arg12[%c3_128, %c0_129, %c0_130], %193 {strides = array<i32>} : memref<4x8x8xf32, #tpu.memory_space<vmem>>, vector<1x8x8xf32>,
    } else {
    }
    %c8_i32 = arith.constant 8 : i32
    %3 = arith.muli %arg1, %c8_i32 : i32
    %4 = tpu.assume_multiple %3, 8 : i32
    %c0 = arith.constant 0 : index
    %5 = arith.index_cast %4 : i32 to index
    %c0_1 = arith.constant 0 : index
    %6 = vector.load %arg2[%c0, %5, %c0_1] : memref<1x8x32xf32, #tpu.memory_space<vmem>>, vector<1x8x32xf32>
    %7 = vector.shape_cast %6 : vector<1x8x32xf32> to vector<8x32xf32>
    %c0_2 = arith.constant 0 : index
    %c0_3 = arith.constant 0 : index
    %8 = vector.load %arg3[%c0_2, %c0_3] : memref<32x32xf32, #tpu.memory_space<vmem>>, vector<32x32xf32>
    %cst = arith.constant dense<0.000000e+00> : vector<8x32xf32>
    %9 = tpu.matmul %7, %8, %cst {dimension_numbers = #tpu.dot_dimension_numbers<[1], [0], [0], [1], [0, 0, 1, 1], [], []>} : vector<8x32xf32>, vector<32x32xf32>, vector<8x32xf32> -> vector<8x32xf32>
    %c0_4 = arith.constant 0 : index
    %c0_5 = arith.constant 0 : index
    %10 = vector.load %arg6[%c0_4, %c0_5] : memref<3x32xf32, #tpu.memory_space<vmem>>, vector<1x32xf32>
    %11 = vector.broadcast %10 : vector<1x32xf32> to vector<8x32xf32>
    %12 = arith.addf %9, %11 : vector<8x32xf32>
    %13 = vector.extract_strided_slice %12 {offsets = [0, 0], sizes = [8, 8], strides = [1, 1]} : vector<8x32xf32> to vector<8x8xf32>
    %c0_6 = arith.constant 0 : index
    %c0_7 = arith.constant 0 : index
    %c0_8 = arith.constant 0 : index
    %14 = vector.load %arg10[%c0_6, %c0_7, %c0_8] : memref<4x8x8xf32, #tpu.memory_space<vmem>>, vector<1x8x8xf32>
    %15 = vector.shape_cast %14 : vector<1x8x8xf32> to vector<8x8xf32>
    %16 = vector.shape_cast %13 : vector<8x8xf32> to vector<1x8x8xf32>
    tpu.vector_store %arg10[%c0_6, %c0_7, %c0_8], %16 {strides = array<i32>} : memref<4x8x8xf32, #tpu.memory_space<vmem>>, vector<1x8x8xf32>,
    %17 = vector.extract_strided_slice %12 {offsets = [0, 8], sizes = [8, 8], strides = [1, 1]} : vector<8x32xf32> to vector<8x8xf32>
    %c1 = arith.constant 1 : index
    %c0_9 = arith.constant 0 : index
    %c0_10 = arith.constant 0 : index
    %18 = vector.load %arg10[%c1, %c0_9, %c0_10] : memref<4x8x8xf32, #tpu.memory_space<vmem>>, vector<1x8x8xf32>
    %19 = vector.shape_cast %18 : vector<1x8x8xf32> to vector<8x8xf32>
    %20 = vector.shape_cast %17 : vector<8x8xf32> to vector<1x8x8xf32>
    tpu.vector_store %arg10[%c1, %c0_9, %c0_10], %20 {strides = array<i32>} : memref<4x8x8xf32, #tpu.memory_space<vmem>>, vector<1x8x8xf32>,
    %21 = vector.extract_strided_slice %12 {offsets = [0, 16], sizes = [8, 8], strides = [1, 1]} : vector<8x32xf32> to vector<8x8xf32>
    %c2 = arith.constant 2 : index
    %c0_11 = arith.constant 0 : index
    %c0_12 = arith.constant 0 : index
    %22 = vector.load %arg10[%c2, %c0_11, %c0_12] : memref<4x8x8xf32, #tpu.memory_space<vmem>>, vector<1x8x8xf32>
    %23 = vector.shape_cast %22 : vector<1x8x8xf32> to vector<8x8xf32>
    %24 = vector.shape_cast %21 : vector<8x8xf32> to vector<1x8x8xf32>
    tpu.vector_store %arg10[%c2, %c0_11, %c0_12], %24 {strides = array<i32>} : memref<4x8x8xf32, #tpu.memory_space<vmem>>, vector<1x8x8xf32>,
    %25 = vector.extract_strided_slice %12 {offsets = [0, 24], sizes = [8, 8], strides = [1, 1]} : vector<8x32xf32> to vector<8x8xf32>
    %c3 = arith.constant 3 : index
    %c0_13 = arith.constant 0 : index
    %c0_14 = arith.constant 0 : index
    %26 = vector.load %arg10[%c3, %c0_13, %c0_14] : memref<4x8x8xf32, #tpu.memory_space<vmem>>, vector<1x8x8xf32>
    %27 = vector.shape_cast %26 : vector<1x8x8xf32> to vector<8x8xf32>
    %28 = vector.shape_cast %25 : vector<8x8xf32> to vector<1x8x8xf32>
    tpu.vector_store %arg10[%c3, %c0_13, %c0_14], %28 {strides = array<i32>} : memref<4x8x8xf32, #tpu.memory_space<vmem>>, vector<1x8x8xf32>,
    %cst_15 = arith.constant 0.000000e+00 : f32
    %29 = vector.broadcast %cst_15 : f32 to vector<8x32xf32>
    %c0_16 = arith.constant 0 : index
    %c0_17 = arith.constant 0 : index
    %30 = vector.load %arg13[%c0_16, %c0_17] : memref<8x32xf32, #tpu.memory_space<vmem>>, vector<8x32xf32>
    tpu.vector_store %arg13[%c0_16, %c0_17], %29 {strides = array<i32>} : memref<8x32xf32, #tpu.memory_space<vmem>>, vector<8x32xf32>,
    %c0_i32_18 = arith.constant 0 : i32
    %31 = arith.index_cast %c0_i32_18 : i32 to index
    %c0_19 = arith.constant 0 : index
    %c0_20 = arith.constant 0 : index
    %32 = vector.load %arg10[%31, %c0_19, %c0_20] : memref<4x8x8xf32, #tpu.memory_space<vmem>>, vector<1x8x8xf32>
    %33 = vector.shape_cast %32 : vector<1x8x8xf32> to vector<8x8xf32>
    %34 = arith.index_cast %c0_i32_18 : i32 to index
    %c0_21 = arith.constant 0 : index
    %c0_22 = arith.constant 0 : index
    %35 = vector.load %arg11[%34, %c0_21, %c0_22] : memref<4x8x8xf32, #tpu.memory_space<vmem>>, vector<1x8x8xf32>
    %36 = vector.shape_cast %35 : vector<1x8x8xf32> to vector<8x8xf32>
    %37 = arith.index_cast %c0_i32_18 : i32 to index
    %c0_23 = arith.constant 0 : index
    %c0_24 = arith.constant 0 : index
    %38 = vector.load %arg12[%37, %c0_23, %c0_24] : memref<4x8x8xf32, #tpu.memory_space<vmem>>, vector<1x8x8xf32>
    %39 = vector.shape_cast %38 : vector<1x8x8xf32> to vector<8x8xf32>
    %cst_25 = arith.constant dense<0.000000e+00> : vector<8x8xf32>
    %40 = tpu.matmul %33, %36, %cst_25 {dimension_numbers = #tpu.dot_dimension_numbers<[1], [1], [0], [0], [0, 0, 1, 0], [], []>} : vector<8x8xf32>, vector<8x8xf32>, vector<8x8xf32> -> vector<8x8xf32>
    %cst_26 = arith.constant dense<0xFF800000> : vector<8xf32>
    %41 = vector.multi_reduction <maximumf>, %40, %cst_26 [1] : vector<8x8xf32> to vector<8xf32>
    %42 = vector.shape_cast %41 : vector<8xf32> to vector<8x1xf32>
    %43 = vector.broadcast %42 : vector<8x1xf32> to vector<8x8xf32>
    %44 = arith.subf %40, %43 : vector<8x8xf32>
    %45 = math.exp %44 : vector<8x8xf32>
    %cst_27 = arith.constant dense<0.000000e+00> : vector<8xf32>
    %46 = vector.multi_reduction <add>, %45, %cst_27 [1] : vector<8x8xf32> to vector<8xf32>
    %47 = vector.shape_cast %46 : vector<8xf32> to vector<8x1xf32>
    %cst_28 = arith.constant dense<0.000000e+00> : vector<8x8xf32>
    %48 = tpu.matmul %45, %39, %cst_28 {dimension_numbers = #tpu.dot_dimension_numbers<[1], [0], [0], [1], [0, 0, 1, 1], [], []>} : vector<8x8xf32>, vector<8x8xf32>, vector<8x8xf32> -> vector<8x8xf32>
    %49 = tpu.reciprocal %47 : vector<8x1xf32> -> vector<8x1xf32>
    %50 = vector.broadcast %49 : vector<8x1xf32> to vector<8x8xf32>
    %51 = arith.mulf %48, %50 : vector<8x8xf32>
    %c0_29 = arith.constant 0 : index
    %c0_30 = arith.constant 0 : index
    %52 = vector.load %arg13[%c0_29, %c0_30] : memref<8x32xf32, #tpu.memory_space<vmem>>, vector<8x32xf32>
    %53 = arith.index_cast %c0_i32_18 : i32 to index
    %c0_31 = arith.constant 0 : index
    %c0_32 = arith.constant 0 : index
    %54 = vector.load %arg7[%53, %c0_31, %c0_32] : memref<4x8x32xf32, #tpu.memory_space<vmem>>, vector<1x8x32xf32>
    %55 = vector.shape_cast %54 : vector<1x8x32xf32> to vector<8x32xf32>
    %cst_33 = arith.constant dense<0.000000e+00> : vector<8x32xf32>
    %56 = tpu.matmul %51, %55, %cst_33 {dimension_numbers = #tpu.dot_dimension_numbers<[1], [0], [0], [1], [0, 0, 1, 1], [], []>} : vector<8x8xf32>, vector<8x32xf32>, vector<8x32xf32> -> vector<8x32xf32>
    %57 = arith.addf %52, %56 : vector<8x32xf32>
    %c0_34 = arith.constant 0 : index
    %c0_35 = arith.constant 0 : index
    %58 = vector.load %arg13[%c0_34, %c0_35] : memref<8x32xf32, #tpu.memory_space<vmem>>, vector<8x32xf32>
    tpu.vector_store %arg13[%c0_34, %c0_35], %57 {strides = array<i32>} : memref<8x32xf32, #tpu.memory_space<vmem>>, vector<8x32xf32>,
    %c1_i32 = arith.constant 1 : i32
    %59 = arith.index_cast %c1_i32 : i32 to index
    %c0_36 = arith.constant 0 : index
    %c0_37 = arith.constant 0 : index
    %60 = vector.load %arg10[%59, %c0_36, %c0_37] : memref<4x8x8xf32, #tpu.memory_space<vmem>>, vector<1x8x8xf32>
    %61 = vector.shape_cast %60 : vector<1x8x8xf32> to vector<8x8xf32>
    %62 = arith.index_cast %c1_i32 : i32 to index
    %c0_38 = arith.constant 0 : index
    %c0_39 = arith.constant 0 : index
    %63 = vector.load %arg11[%62, %c0_38, %c0_39] : memref<4x8x8xf32, #tpu.memory_space<vmem>>, vector<1x8x8xf32>
    %64 = vector.shape_cast %63 : vector<1x8x8xf32> to vector<8x8xf32>
    %65 = arith.index_cast %c1_i32 : i32 to index
    %c0_40 = arith.constant 0 : index
    %c0_41 = arith.constant 0 : index
    %66 = vector.load %arg12[%65, %c0_40, %c0_41] : memref<4x8x8xf32, #tpu.memory_space<vmem>>, vector<1x8x8xf32>
    %67 = vector.shape_cast %66 : vector<1x8x8xf32> to vector<8x8xf32>
    %cst_42 = arith.constant dense<0.000000e+00> : vector<8x8xf32>
    %68 = tpu.matmul %61, %64, %cst_42 {dimension_numbers = #tpu.dot_dimension_numbers<[1], [1], [0], [0], [0, 0, 1, 0], [], []>} : vector<8x8xf32>, vector<8x8xf32>, vector<8x8xf32> -> vector<8x8xf32>
    %cst_43 = arith.constant dense<0xFF800000> : vector<8xf32>
    %69 = vector.multi_reduction <maximumf>, %68, %cst_43 [1] : vector<8x8xf32> to vector<8xf32>
    %70 = vector.shape_cast %69 : vector<8xf32> to vector<8x1xf32>
    %71 = vector.broadcast %70 : vector<8x1xf32> to vector<8x8xf32>
    %72 = arith.subf %68, %71 : vector<8x8xf32>
    %73 = math.exp %72 : vector<8x8xf32>
    %cst_44 = arith.constant dense<0.000000e+00> : vector<8xf32>
    %74 = vector.multi_reduction <add>, %73, %cst_44 [1] : vector<8x8xf32> to vector<8xf32>
    %75 = vector.shape_cast %74 : vector<8xf32> to vector<8x1xf32>
    %cst_45 = arith.constant dense<0.000000e+00> : vector<8x8xf32>
    %76 = tpu.matmul %73, %67, %cst_45 {dimension_numbers = #tpu.dot_dimension_numbers<[1], [0], [0], [1], [0, 0, 1, 1], [], []>} : vector<8x8xf32>, vector<8x8xf32>, vector<8x8xf32> -> vector<8x8xf32>
    %77 = tpu.reciprocal %75 : vector<8x1xf32> -> vector<8x1xf32>
    %78 = vector.broadcast %77 : vector<8x1xf32> to vector<8x8xf32>
    %79 = arith.mulf %76, %78 : vector<8x8xf32>
    %c0_46 = arith.constant 0 : index
    %c0_47 = arith.constant 0 : index
    %80 = vector.load %arg13[%c0_46, %c0_47] : memref<8x32xf32, #tpu.memory_space<vmem>>, vector<8x32xf32>
    %81 = arith.index_cast %c1_i32 : i32 to index
    %c0_48 = arith.constant 0 : index
    %c0_49 = arith.constant 0 : index
    %82 = vector.load %arg7[%81, %c0_48, %c0_49] : memref<4x8x32xf32, #tpu.memory_space<vmem>>, vector<1x8x32xf32>
    %83 = vector.shape_cast %82 : vector<1x8x32xf32> to vector<8x32xf32>
    %cst_50 = arith.constant dense<0.000000e+00> : vector<8x32xf32>
    %84 = tpu.matmul %79, %83, %cst_50 {dimension_numbers = #tpu.dot_dimension_numbers<[1], [0], [0], [1], [0, 0, 1, 1], [], []>} : vector<8x8xf32>, vector<8x32xf32>, vector<8x32xf32> -> vector<8x32xf32>
    %85 = arith.addf %80, %84 : vector<8x32xf32>
    %c0_51 = arith.constant 0 : index
    %c0_52 = arith.constant 0 : index
    %86 = vector.load %arg13[%c0_51, %c0_52] : memref<8x32xf32, #tpu.memory_space<vmem>>, vector<8x32xf32>
    tpu.vector_store %arg13[%c0_51, %c0_52], %85 {strides = array<i32>} : memref<8x32xf32, #tpu.memory_space<vmem>>, vector<8x32xf32>,
    %c2_i32 = arith.constant 2 : i32
    %87 = arith.index_cast %c2_i32 : i32 to index
    %c0_53 = arith.constant 0 : index
    %c0_54 = arith.constant 0 : index
    %88 = vector.load %arg10[%87, %c0_53, %c0_54] : memref<4x8x8xf32, #tpu.memory_space<vmem>>, vector<1x8x8xf32>
    %89 = vector.shape_cast %88 : vector<1x8x8xf32> to vector<8x8xf32>
    %90 = arith.index_cast %c2_i32 : i32 to index
    %c0_55 = arith.constant 0 : index
    %c0_56 = arith.constant 0 : index
    %91 = vector.load %arg11[%90, %c0_55, %c0_56] : memref<4x8x8xf32, #tpu.memory_space<vmem>>, vector<1x8x8xf32>
    %92 = vector.shape_cast %91 : vector<1x8x8xf32> to vector<8x8xf32>
    %93 = arith.index_cast %c2_i32 : i32 to index
    %c0_57 = arith.constant 0 : index
    %c0_58 = arith.constant 0 : index
    %94 = vector.load %arg12[%93, %c0_57, %c0_58] : memref<4x8x8xf32, #tpu.memory_space<vmem>>, vector<1x8x8xf32>
    %95 = vector.shape_cast %94 : vector<1x8x8xf32> to vector<8x8xf32>
    %cst_59 = arith.constant dense<0.000000e+00> : vector<8x8xf32>
    %96 = tpu.matmul %89, %92, %cst_59 {dimension_numbers = #tpu.dot_dimension_numbers<[1], [1], [0], [0], [0, 0, 1, 0], [], []>} : vector<8x8xf32>, vector<8x8xf32>, vector<8x8xf32> -> vector<8x8xf32>
    %cst_60 = arith.constant dense<0xFF800000> : vector<8xf32>
    %97 = vector.multi_reduction <maximumf>, %96, %cst_60 [1] : vector<8x8xf32> to vector<8xf32>
    %98 = vector.shape_cast %97 : vector<8xf32> to vector<8x1xf32>
    %99 = vector.broadcast %98 : vector<8x1xf32> to vector<8x8xf32>
    %100 = arith.subf %96, %99 : vector<8x8xf32>
    %101 = math.exp %100 : vector<8x8xf32>
    %cst_61 = arith.constant dense<0.000000e+00> : vector<8xf32>
    %102 = vector.multi_reduction <add>, %101, %cst_61 [1] : vector<8x8xf32> to vector<8xf32>
    %103 = vector.shape_cast %102 : vector<8xf32> to vector<8x1xf32>
    %cst_62 = arith.constant dense<0.000000e+00> : vector<8x8xf32>
    %104 = tpu.matmul %101, %95, %cst_62 {dimension_numbers = #tpu.dot_dimension_numbers<[1], [0], [0], [1], [0, 0, 1, 1], [], []>} : vector<8x8xf32>, vector<8x8xf32>, vector<8x8xf32> -> vector<8x8xf32>
    %105 = tpu.reciprocal %103 : vector<8x1xf32> -> vector<8x1xf32>
    %106 = vector.broadcast %105 : vector<8x1xf32> to vector<8x8xf32>
    %107 = arith.mulf %104, %106 : vector<8x8xf32>
    %c0_63 = arith.constant 0 : index
    %c0_64 = arith.constant 0 : index
    %108 = vector.load %arg13[%c0_63, %c0_64] : memref<8x32xf32, #tpu.memory_space<vmem>>, vector<8x32xf32>
    %109 = arith.index_cast %c2_i32 : i32 to index
    %c0_65 = arith.constant 0 : index
    %c0_66 = arith.constant 0 : index
    %110 = vector.load %arg7[%109, %c0_65, %c0_66] : memref<4x8x32xf32, #tpu.memory_space<vmem>>, vector<1x8x32xf32>
    %111 = vector.shape_cast %110 : vector<1x8x32xf32> to vector<8x32xf32>
    %cst_67 = arith.constant dense<0.000000e+00> : vector<8x32xf32>
    %112 = tpu.matmul %107, %111, %cst_67 {dimension_numbers = #tpu.dot_dimension_numbers<[1], [0], [0], [1], [0, 0, 1, 1], [], []>} : vector<8x8xf32>, vector<8x32xf32>, vector<8x32xf32> -> vector<8x32xf32>
    %113 = arith.addf %108, %112 : vector<8x32xf32>
    %c0_68 = arith.constant 0 : index
    %c0_69 = arith.constant 0 : index
    %114 = vector.load %arg13[%c0_68, %c0_69] : memref<8x32xf32, #tpu.memory_space<vmem>>, vector<8x32xf32>
    tpu.vector_store %arg13[%c0_68, %c0_69], %113 {strides = array<i32>} : memref<8x32xf32, #tpu.memory_space<vmem>>, vector<8x32xf32>,
    %c3_i32 = arith.constant 3 : i32
    %115 = arith.index_cast %c3_i32 : i32 to index
    %c0_70 = arith.constant 0 : index
    %c0_71 = arith.constant 0 : index
    %116 = vector.load %arg10[%115, %c0_70, %c0_71] : memref<4x8x8xf32, #tpu.memory_space<vmem>>, vector<1x8x8xf32>
    %117 = vector.shape_cast %116 : vector<1x8x8xf32> to vector<8x8xf32>
    %118 = arith.index_cast %c3_i32 : i32 to index
    %c0_72 = arith.constant 0 : index
    %c0_73 = arith.constant 0 : index
    %119 = vector.load %arg11[%118, %c0_72, %c0_73] : memref<4x8x8xf32, #tpu.memory_space<vmem>>, vector<1x8x8xf32>
    %120 = vector.shape_cast %119 : vector<1x8x8xf32> to vector<8x8xf32>
    %121 = arith.index_cast %c3_i32 : i32 to index
    %c0_74 = arith.constant 0 : index
    %c0_75 = arith.constant 0 : index
    %122 = vector.load %arg12[%121, %c0_74, %c0_75] : memref<4x8x8xf32, #tpu.memory_space<vmem>>, vector<1x8x8xf32>
    %123 = vector.shape_cast %122 : vector<1x8x8xf32> to vector<8x8xf32>
    %cst_76 = arith.constant dense<0.000000e+00> : vector<8x8xf32>
    %124 = tpu.matmul %117, %120, %cst_76 {dimension_numbers = #tpu.dot_dimension_numbers<[1], [1], [0], [0], [0, 0, 1, 0], [], []>} : vector<8x8xf32>, vector<8x8xf32>, vector<8x8xf32> -> vector<8x8xf32>
    %cst_77 = arith.constant dense<0xFF800000> : vector<8xf32>
    %125 = vector.multi_reduction <maximumf>, %124, %cst_77 [1] : vector<8x8xf32> to vector<8xf32>
    %126 = vector.shape_cast %125 : vector<8xf32> to vector<8x1xf32>
    %127 = vector.broadcast %126 : vector<8x1xf32> to vector<8x8xf32>
    %128 = arith.subf %124, %127 : vector<8x8xf32>
    %129 = math.exp %128 : vector<8x8xf32>
    %cst_78 = arith.constant dense<0.000000e+00> : vector<8xf32>
    %130 = vector.multi_reduction <add>, %129, %cst_78 [1] : vector<8x8xf32> to vector<8xf32>
    %131 = vector.shape_cast %130 : vector<8xf32> to vector<8x1xf32>
    %cst_79 = arith.constant dense<0.000000e+00> : vector<8x8xf32>
    %132 = tpu.matmul %129, %123, %cst_79 {dimension_numbers = #tpu.dot_dimension_numbers<[1], [0], [0], [1], [0, 0, 1, 1], [], []>} : vector<8x8xf32>, vector<8x8xf32>, vector<8x8xf32> -> vector<8x8xf32>
    %133 = tpu.reciprocal %131 : vector<8x1xf32> -> vector<8x1xf32>
    %134 = vector.broadcast %133 : vector<8x1xf32> to vector<8x8xf32>
    %135 = arith.mulf %132, %134 : vector<8x8xf32>
    %c0_80 = arith.constant 0 : index
    %c0_81 = arith.constant 0 : index
    %136 = vector.load %arg13[%c0_80, %c0_81] : memref<8x32xf32, #tpu.memory_space<vmem>>, vector<8x32xf32>
    %137 = arith.index_cast %c3_i32 : i32 to index
    %c0_82 = arith.constant 0 : index
    %c0_83 = arith.constant 0 : index
    %138 = vector.load %arg7[%137, %c0_82, %c0_83] : memref<4x8x32xf32, #tpu.memory_space<vmem>>, vector<1x8x32xf32>
    %139 = vector.shape_cast %138 : vector<1x8x32xf32> to vector<8x32xf32>
    %cst_84 = arith.constant dense<0.000000e+00> : vector<8x32xf32>
    %140 = tpu.matmul %135, %139, %cst_84 {dimension_numbers = #tpu.dot_dimension_numbers<[1], [0], [0], [1], [0, 0, 1, 1], [], []>} : vector<8x8xf32>, vector<8x32xf32>, vector<8x32xf32> -> vector<8x32xf32>
    %141 = arith.addf %136, %140 : vector<8x32xf32>
    %c0_85 = arith.constant 0 : index
    %c0_86 = arith.constant 0 : index
    %142 = vector.load %arg13[%c0_85, %c0_86] : memref<8x32xf32, #tpu.memory_space<vmem>>, vector<8x32xf32>
    tpu.vector_store %arg13[%c0_85, %c0_86], %141 {strides = array<i32>} : memref<8x32xf32, #tpu.memory_space<vmem>>, vector<8x32xf32>,
    %c4_i32 = arith.constant 4 : i32
    %c0_87 = arith.constant 0 : index
    %c0_88 = arith.constant 0 : index
    %143 = vector.load %arg13[%c0_87, %c0_88] : memref<8x32xf32, #tpu.memory_space<vmem>>, vector<8x32xf32>
    %c0_89 = arith.constant 0 : index
    %c0_90 = arith.constant 0 : index
    %144 = vector.load %arg8[%c0_89, %c0_90] : memref<1x32xf32, #tpu.memory_space<vmem>>, vector<1x32xf32>
    %145 = vector.broadcast %144 : vector<1x32xf32> to vector<8x32xf32>
    %146 = arith.addf %143, %145 : vector<8x32xf32>
    %c0_91 = arith.constant 0 : index
    %c0_92 = arith.constant 0 : index
    %c0_93 = arith.constant 0 : index
    %147 = vector.load %arg9[%c0_91, %c0_92, %c0_93] : memref<1x8x32xf32, #tpu.memory_space<vmem>>, vector<1x8x32xf32>
    %148 = vector.shape_cast %147 : vector<1x8x32xf32> to vector<8x32xf32>
    %149 = vector.shape_cast %146 : vector<8x32xf32> to vector<1x8x32xf32>
    tpu.vector_store %arg9[%c0_91, %c0_92, %c0_93], %149 {strides = array<i32>} : memref<1x8x32xf32, #tpu.memory_space<vmem>>, vector<1x8x32xf32>,
    return
  }
  func.func @transform_0(%arg0: i32, %arg1: i32) -> (i32, i32, i32) {
    %c0_i32 = arith.constant 0 : i32
    %c0_i32_0 = arith.constant 0 : i32
    %c0_i32_1 = arith.constant 0 : i32
    return %arg0, %c0_i32, %c0_i32_0 : i32, i32, i32
  }
  func.func @transform_1(%arg0: i32, %arg1: i32) -> (i32, i32) {
    %c0_i32 = arith.constant 0 : i32
    %c0_i32_0 = arith.constant 0 : i32
    %c0_i32_1 = arith.constant 0 : i32
    return %c0_i32, %c0_i32_0 : i32, i32
  }
  func.func @transform_2(%arg0: i32, %arg1: i32) -> (i32, i32) {
    %c0_i32 = arith.constant 0 : i32
    %c0_i32_0 = arith.constant 0 : i32
    %c0_i32_1 = arith.constant 0 : i32
    return %c0_i32, %c0_i32_0 : i32, i32
  }
  func.func @transform_3(%arg0: i32, %arg1: i32) -> (i32, i32) {
    %c0_i32 = arith.constant 0 : i32
    %c0_i32_0 = arith.constant 0 : i32
    %c0_i32_1 = arith.constant 0 : i32
    return %c0_i32, %c0_i32_0 : i32, i32
  }
  func.func @transform_4(%arg0: i32, %arg1: i32) -> (i32, i32) {
    %c0_i32 = arith.constant 0 : i32
    %c0_i32_0 = arith.constant 0 : i32
    %c0_i32_1 = arith.constant 0 : i32
    return %c0_i32, %c0_i32_0 : i32, i32
  }
  func.func @transform_5(%arg0: i32, %arg1: i32) -> (i32, i32, i32) {
    %c0_i32 = arith.constant 0 : i32
    %c0_i32_0 = arith.constant 0 : i32
    %c0_i32_1 = arith.constant 0 : i32
    %c0_i32_2 = arith.constant 0 : i32
    return %c0_i32, %c0_i32_0, %c0_i32_1 : i32, i32, i32
  }
  func.func @transform_6(%arg0: i32, %arg1: i32) -> (i32, i32) {
    %c0_i32 = arith.constant 0 : i32
    %c0_i32_0 = arith.constant 0 : i32
    %c0_i32_1 = arith.constant 0 : i32
    return %c0_i32, %c0_i32_0 : i32, i32
  }
  func.func @transform_7(%arg0: i32, %arg1: i32) -> (i32, i32, i32) {
    %c0_i32 = arith.constant 0 : i32
    %c0_i32_0 = arith.constant 0 : i32
    return %arg0, %arg1, %c0_i32 : i32, i32, i32
  }
}

module attributes {stable_mosaic.version = 11 : i64} {
  func.func @attention_kernel(%arg0: i32, %arg1: i32, %arg2: memref<1x8x32xf32, #tpu.memory_space<vmem>>, %arg3: memref<32x32xf32, #tpu.memory_space<vmem>>, %arg4: memref<32x32xf32, #tpu.memory_space<vmem>>, %arg5: memref<32x32xf32, #tpu.memory_space<vmem>>, %arg6: memref<3x32xf32, #tpu.memory_space<vmem>>, %arg7: memref<4x8x32xf32, #tpu.memory_space<vmem>>, %arg8: memref<1x32xf32, #tpu.memory_space<vmem>>, %arg9: memref<1x8x32xf32, #tpu.memory_space<vmem>>, %arg10: memref<4x8x8xf32, #tpu.memory_space<vmem>>, %arg11: memref<4x8x8xf32, #tpu.memory_space<vmem>>, %arg12: memref<4x8x8xf32, #tpu.memory_space<vmem>>, %arg13: memref<8x32xf32, #tpu.memory_space<vmem>>) attributes {dimension_semantics = [#tpu.dimension_semantics<parallel>, #tpu.dimension_semantics<arbitrary>], iteration_bounds = array<i64: 2, 1>, scalar_prefetch = 0 : i64, scratch_operands = 4 : i64, tpu.core_type = #tpu.core_type<tc>, window_params = [{transform_indices = @transform_0, window_bounds = array<i64: 1, 8, 32>}, {pipeline_mode = #tpu.pipeline_mode<synchronous>, transform_indices = @transform_1, window_bounds = array<i64: 32, 32>}, {pipeline_mode = #tpu.pipeline_mode<synchronous>, transform_indices = @transform_2, window_bounds = array<i64: 32, 32>}, {pipeline_mode = #tpu.pipeline_mode<synchronous>, transform_indices = @transform_3, window_bounds = array<i64: 32, 32>}, {pipeline_mode = #tpu.pipeline_mode<synchronous>, transform_indices = @transform_4, window_bounds = array<i64: 3, 32>}, {pipeline_mode = #tpu.pipeline_mode<synchronous>, transform_indices = @transform_5, window_bounds = array<i64: 4, 8, 32>}, {pipeline_mode = #tpu.pipeline_mode<synchronous>, transform_indices = @transform_6, window_bounds = array<i64: 1, 32>}, {transform_indices = @transform_7, window_bounds = array<i64: 1, 8, 32>}]} {
    %c0_i32 = arith.constant 0 : i32
    %0 = arith.cmpi eq, %arg1, %c0_i32 : i32
    %1 = arith.extui %0 : i1 to i32
    %c0_i32_0 = arith.constant 0 : i32
    %2 = arith.cmpi ne, %1, %c0_i32_0 : i32
    scf.if %2 {
      %c0_94 = arith.constant 0 : index
      %c0_95 = arith.constant 0 : index
      %c0_96 = arith.constant 0 : index
      %150 = vector.load %arg2[%c0_94, %c0_95, %c0_96] : memref<1x8x32xf32, #tpu.memory_space<vmem>>, vector<1x8x32xf32>
      %151 = vector.shape_cast %150 : vector<1x8x32xf32> to vector<8x32xf32>
      %c0_97 = arith.constant 0 : index
      %c0_98 = arith.constant 0 : index
      %152 = vector.load %arg4[%c0_97, %c0_98] : memref<32x32xf32, #tpu.memory_space<vmem>>, vector<32x32xf32>
      %cst_99 = arith.constant dense<0.000000e+00> : vector<8x32xf32>
      %153 = tpu.matmul %151, %152, %cst_99 {dimension_numbers = #tpu.dot_dimension_numbers<[1], [0], [0], [1], [0, 0, 1, 1], [], []>} : vector<8x32xf32>, vector<32x32xf32>, vector<8x32xf32> -> vector<8x32xf32>
      %c1_100 = arith.constant 1 : index
      %c0_101 = arith.constant 0 : index
      %154 = vector.load %arg6[%c1_100, %c0_101] : memref<3x32xf32, #tpu.memory_space<vmem>>, vector<1x32xf32>
      %155 = vector.broadcast %154 : vector<1x32xf32> to vector<8x32xf32>
      %156 = arith.addf %153, %155 : vector<8x32xf32>
      %c0_102 = arith.constant 0 : index
      %c0_103 = arith.constant 0 : index
      %157 = vector.load %arg5[%c0_102, %c0_103] : memref<32x32xf32, #tpu.memory_space<vmem>>, vector<32x32xf32>
      %cst_104 = arith.constant dense<0.000000e+00> : vector<8x32xf32>
      %158 = tpu.matmul %151, %157, %cst_104 {dimension_numbers = #tpu.dot_dimension_numbers<[1], [0], [0], [1], [0, 0, 1, 1], [], []>} : vector<8x32xf32>, vector<32x32xf32>, vector<8x32xf32> -> vector<8x32xf32>
      %c2_105 = arith.constant 2 : index
      %c0_106 = arith.constant 0 : index
      %159 = vector.load %arg6[%c2_105, %c0_106] : memref<3x32xf32, #tpu.memory_space<vmem>>, vector<1x32xf32>
      %160 = vector.broadcast %159 : vector<1x32xf32> to vector<8x32xf32>
      %161 = arith.addf %158, %160 : vector<8x32xf32>
      %162 = vector.extract_strided_slice %156 {offsets = [0, 0], sizes = [8, 8], strides = [1, 1]} : vector<8x32xf32> to vector<8x8xf32>
      %c0_107 = arith.constant 0 : index
      %c0_108 = arith.constant 0 : index
      %c0_109 = arith.constant 0 : index
      %163 = vector.load %arg11[%c0_107, %c0_108, %c0_109] : memref<4x8x8xf32, #tpu.memory_space<vmem>>, vector<1x8x8xf32>
      %164 = vector.shape_cast %163 : vector<1x8x8xf32> to vector<8x8xf32>
      %165 = vector.shape_cast %162 : vector<8x8xf32> to vector<1x8x8xf32>
      tpu.vector_store %arg11[%c0_107, %c0_108, %c0_109], %165 {strides = array<i32>} : memref<4x8x8xf32, #tpu.memory_space<vmem>>, vector<1x8x8xf32>,
      %166 = vector.extract_strided_slice %161 {offsets = [0, 0], sizes = [8, 8], strides = [1, 1]} : vector<8x32xf32> to vector<8x8xf32>
      %c0_110 = arith.constant 0 : index
      %c0_111 = arith.constant 0 : index
      %c0_112 = arith.constant 0 : index
      %167 = vector.load %arg12[%c0_110, %c0_111, %c0_112] : memref<4x8x8xf32, #tpu.memory_space<vmem>>, vector<1x8x8xf32>
      %168 = vector.shape_cast %167 : vector<1x8x8xf32> to vector<8x8xf32>
      %169 = vector.shape_cast %166 : vector<8x8xf32> to vector<1x8x8xf32>
      tpu.vector_store %arg12[%c0_110, %c0_111, %c0_112], %169 {strides = array<i32>} : memref<4x8x8xf32, #tpu.memory_space<vmem>>, vector<1x8x8xf32>,
      %170 = vector.extract_strided_slice %156 {offsets = [0, 8], sizes = [8, 8], strides = [1, 1]} : vector<8x32xf32> to vector<8x8xf32>
      %c1_113 = arith.constant 1 : index
      %c0_114 = arith.constant 0 : index
      %c0_115 = arith.constant 0 : index
      %171 = vector.load %arg11[%c1_113, %c0_114, %c0_115] : memref<4x8x8xf32, #tpu.memory_space<vmem>>, vector<1x8x8xf32>
      %172 = vector.shape_cast %171 : vector<1x8x8xf32> to vector<8x8xf32>
      %173 = vector.shape_cast %170 : vector<8x8xf32> to vector<1x8x8xf32>
      tpu.vector_store %arg11[%c1_113, %c0_114, %c0_115], %173 {strides = array<i32>} : memref<4x8x8xf32, #tpu.memory_space<vmem>>, vector<1x8x8xf32>,
      %174 = vector.extract_strided_slice %161 {offsets = [0, 8], sizes = [8, 8], strides = [1, 1]} : vector<8x32xf32> to vector<8x8xf32>
      %c1_116 = arith.constant 1 : index
      %c0_117 = arith.constant 0 : index
      %c0_118 = arith.constant 0 : index
      %175 = vector.load %arg12[%c1_116, %c0_117, %c0_118] : memref<4x8x8xf32, #tpu.memory_space<vmem>>, vector<1x8x8xf32>
      %176 = vector.shape_cast %175 : vector<1x8x8xf32> to vector<8x8xf32>
      %177 = vector.shape_cast %174 : vector<8x8xf32> to vector<1x8x8xf32>
      tpu.vector_store %arg12[%c1_116, %c0_117, %c0_118], %177 {strides = array<i32>} : memref<4x8x8xf32, #tpu.memory_space<vmem>>, vector<1x8x8xf32>,
      %178 = vector.extract_strided_slice %156 {offsets = [0, 16], sizes = [8, 8], strides = [1, 1]} : vector<8x32xf32> to vector<8x8xf32>
      %c2_119 = arith.constant 2 : index
      %c0_120 = arith.constant 0 : index
      %c0_121 = arith.constant 0 : index
      %179 = vector.load %arg11[%c2_119, %c0_120, %c0_121] : memref<4x8x8xf32, #tpu.memory_space<vmem>>, vector<1x8x8xf32>
      %180 = vector.shape_cast %179 : vector<1x8x8xf32> to vector<8x8xf32>
      %181 = vector.shape_cast %178 : vector<8x8xf32> to vector<1x8x8xf32>
      tpu.vector_store %arg11[%c2_119, %c0_120, %c0_121], %181 {strides = array<i32>} : memref<4x8x8xf32, #tpu.memory_space<vmem>>, vector<1x8x8xf32>,
      %182 = vector.extract_strided_slice %161 {offsets = [0, 16], sizes = [8, 8], strides = [1, 1]} : vector<8x32xf32> to vector<8x8xf32>
      %c2_122 = arith.constant 2 : index
      %c0_123 = arith.constant 0 : index
      %c0_124 = arith.constant 0 : index
      %183 = vector.load %arg12[%c2_122, %c0_123, %c0_124] : memref<4x8x8xf32, #tpu.memory_space<vmem>>, vector<1x8x8xf32>
      %184 = vector.shape_cast %183 : vector<1x8x8xf32> to vector<8x8xf32>
      %185 = vector.shape_cast %182 : vector<8x8xf32> to vector<1x8x8xf32>
      tpu.vector_store %arg12[%c2_122, %c0_123, %c0_124], %185 {strides = array<i32>} : memref<4x8x8xf32, #tpu.memory_space<vmem>>, vector<1x8x8xf32>,
      %186 = vector.extract_strided_slice %156 {offsets = [0, 24], sizes = [8, 8], strides = [1, 1]} : vector<8x32xf32> to vector<8x8xf32>
      %c3_125 = arith.constant 3 : index
      %c0_126 = arith.constant 0 : index
      %c0_127 = arith.constant 0 : index
      %187 = vector.load %arg11[%c3_125, %c0_126, %c0_127] : memref<4x8x8xf32, #tpu.memory_space<vmem>>, vector<1x8x8xf32>
      %188 = vector.shape_cast %187 : vector<1x8x8xf32> to vector<8x8xf32>
      %189 = vector.shape_cast %186 : vector<8x8xf32> to vector<1x8x8xf32>
      tpu.vector_store %arg11[%c3_125, %c0_126, %c0_127], %189 {strides = array<i32>} : memref<4x8x8xf32, #tpu.memory_space<vmem>>, vector<1x8x8xf32>,
      %190 = vector.extract_strided_slice %161 {offsets = [0, 24], sizes = [8, 8], strides = [1, 1]} : vector<8x32xf32> to vector<8x8xf32>
      %c3_128 = arith.constant 3 : index
      %c0_129 = arith.constant 0 : index
      %c0_130 = arith.constant 0 : index
      %191 = vector.load %arg12[%c3_128, %c0_129, %c0_130] : memref<4x8x8xf32, #tpu.memory_space<vmem>>, vector<1x8x8xf32>
      %192 = vector.shape_cast %191 : vector<1x8x8xf32> to vector<8x8xf32>
      %193 = vector.shape_cast %190 : vector<8x8xf32> to vector<1x8x8xf32>
      tpu.vector_store %arg12[%c3_128, %c0_129, %c0_130], %193 {strides = array<i32>} : memref<4x8x8xf32, #tpu.memory_space<vmem>>, vector<1x8x8xf32>,
    } else {
    }
    %c8_i32 = arith.constant 8 : i32
    %3 = arith.muli %arg1, %c8_i32 : i32
    %4 = tpu.assume_multiple %3, 8 : i32
    %c0 = arith.constant 0 : index
    %5 = arith.index_cast %4 : i32 to index
    %c0_1 = arith.constant 0 : index
    %6 = vector.load %arg2[%c0, %5, %c0_1] : memref<1x8x32xf32, #tpu.memory_space<vmem>>, vector<1x8x32xf32>
    %7 = vector.shape_cast %6 : vector<1x8x32xf32> to vector<8x32xf32>
    %c0_2 = arith.constant 0 : index
    %c0_3 = arith.constant 0 : index
    %8 = vector.load %arg3[%c0_2, %c0_3] : memref<32x32xf32, #tpu.memory_space<vmem>>, vector<32x32xf32>
    %cst = arith.constant dense<0.000000e+00> : vector<8x32xf32>
    %9 = tpu.matmul %7, %8, %cst {dimension_numbers = #tpu.dot_dimension_numbers<[1], [0], [0], [1], [0, 0, 1, 1], [], []>} : vector<8x32xf32>, vector<32x32xf32>, vector<8x32xf32> -> vector<8x32xf32>
    %c0_4 = arith.constant 0 : index
    %c0_5 = arith.constant 0 : index
    %10 = vector.load %arg6[%c0_4, %c0_5] : memref<3x32xf32, #tpu.memory_space<vmem>>, vector<1x32xf32>
    %11 = vector.broadcast %10 : vector<1x32xf32> to vector<8x32xf32>
    %12 = arith.addf %9, %11 : vector<8x32xf32>
    %13 = vector.extract_strided_slice %12 {offsets = [0, 0], sizes = [8, 8], strides = [1, 1]} : vector<8x32xf32> to vector<8x8xf32>
    %c0_6 = arith.constant 0 : index
    %c0_7 = arith.constant 0 : index
    %c0_8 = arith.constant 0 : index
    %14 = vector.load %arg10[%c0_6, %c0_7, %c0_8] : memref<4x8x8xf32, #tpu.memory_space<vmem>>, vector<1x8x8xf32>
    %15 = vector.shape_cast %14 : vector<1x8x8xf32> to vector<8x8xf32>
    %16 = vector.shape_cast %13 : vector<8x8xf32> to vector<1x8x8xf32>
    tpu.vector_store %arg10[%c0_6, %c0_7, %c0_8], %16 {strides = array<i32>} : memref<4x8x8xf32, #tpu.memory_space<vmem>>, vector<1x8x8xf32>,
    %17 = vector.extract_strided_slice %12 {offsets = [0, 8], sizes = [8, 8], strides = [1, 1]} : vector<8x32xf32> to vector<8x8xf32>
    %c1 = arith.constant 1 : index
    %c0_9 = arith.constant 0 : index
    %c0_10 = arith.constant 0 : index
    %18 = vector.load %arg10[%c1, %c0_9, %c0_10] : memref<4x8x8xf32, #tpu.memory_space<vmem>>, vector<1x8x8xf32>
    %19 = vector.shape_cast %18 : vector<1x8x8xf32> to vector<8x8xf32>
    %20 = vector.shape_cast %17 : vector<8x8xf32> to vector<1x8x8xf32>
    tpu.vector_store %arg10[%c1, %c0_9, %c0_10], %20 {strides = array<i32>} : memref<4x8x8xf32, #tpu.memory_space<vmem>>, vector<1x8x8xf32>,
    %21 = vector.extract_strided_slice %12 {offsets = [0, 16], sizes = [8, 8], strides = [1, 1]} : vector<8x32xf32> to vector<8x8xf32>
    %c2 = arith.constant 2 : index
    %c0_11 = arith.constant 0 : index
    %c0_12 = arith.constant 0 : index
    %22 = vector.load %arg10[%c2, %c0_11, %c0_12] : memref<4x8x8xf32, #tpu.memory_space<vmem>>, vector<1x8x8xf32>
    %23 = vector.shape_cast %22 : vector<1x8x8xf32> to vector<8x8xf32>
    %24 = vector.shape_cast %21 : vector<8x8xf32> to vector<1x8x8xf32>
    tpu.vector_store %arg10[%c2, %c0_11, %c0_12], %24 {strides = array<i32>} : memref<4x8x8xf32, #tpu.memory_space<vmem>>, vector<1x8x8xf32>,
    %25 = vector.extract_strided_slice %12 {offsets = [0, 24], sizes = [8, 8], strides = [1, 1]} : vector<8x32xf32> to vector<8x8xf32>
    %c3 = arith.constant 3 : index
    %c0_13 = arith.constant 0 : index
    %c0_14 = arith.constant 0 : index
    %26 = vector.load %arg10[%c3, %c0_13, %c0_14] : memref<4x8x8xf32, #tpu.memory_space<vmem>>, vector<1x8x8xf32>
    %27 = vector.shape_cast %26 : vector<1x8x8xf32> to vector<8x8xf32>
    %28 = vector.shape_cast %25 : vector<8x8xf32> to vector<1x8x8xf32>
    tpu.vector_store %arg10[%c3, %c0_13, %c0_14], %28 {strides = array<i32>} : memref<4x8x8xf32, #tpu.memory_space<vmem>>, vector<1x8x8xf32>,
    %cst_15 = arith.constant 0.000000e+00 : f32
    %29 = vector.broadcast %cst_15 : f32 to vector<8x32xf32>
    %c0_16 = arith.constant 0 : index
    %c0_17 = arith.constant 0 : index
    %30 = vector.load %arg13[%c0_16, %c0_17] : memref<8x32xf32, #tpu.memory_space<vmem>>, vector<8x32xf32>
    tpu.vector_store %arg13[%c0_16, %c0_17], %29 {strides = array<i32>} : memref<8x32xf32, #tpu.memory_space<vmem>>, vector<8x32xf32>,
    %c0_i32_18 = arith.constant 0 : i32
    %31 = arith.index_cast %c0_i32_18 : i32 to index
    %c0_19 = arith.constant 0 : index
    %c0_20 = arith.constant 0 : index
    %32 = vector.load %arg10[%31, %c0_19, %c0_20] : memref<4x8x8xf32, #tpu.memory_space<vmem>>, vector<1x8x8xf32>
    %33 = vector.shape_cast %32 : vector<1x8x8xf32> to vector<8x8xf32>
    %34 = arith.index_cast %c0_i32_18 : i32 to index
    %c0_21 = arith.constant 0 : index
    %c0_22 = arith.constant 0 : index
    %35 = vector.load %arg11[%34, %c0_21, %c0_22] : memref<4x8x8xf32, #tpu.memory_space<vmem>>, vector<1x8x8xf32>
    %36 = vector.shape_cast %35 : vector<1x8x8xf32> to vector<8x8xf32>
    %37 = arith.index_cast %c0_i32_18 : i32 to index
    %c0_23 = arith.constant 0 : index
    %c0_24 = arith.constant 0 : index
    %38 = vector.load %arg12[%37, %c0_23, %c0_24] : memref<4x8x8xf32, #tpu.memory_space<vmem>>, vector<1x8x8xf32>
    %39 = vector.shape_cast %38 : vector<1x8x8xf32> to vector<8x8xf32>
    %cst_25 = arith.constant dense<0.000000e+00> : vector<8x8xf32>
    %40 = tpu.matmul %33, %36, %cst_25 {dimension_numbers = #tpu.dot_dimension_numbers<[1], [1], [0], [0], [0, 0, 1, 0], [], []>} : vector<8x8xf32>, vector<8x8xf32>, vector<8x8xf32> -> vector<8x8xf32>
    %cst_26 = arith.constant dense<0xFF800000> : vector<8xf32>
    %41 = vector.multi_reduction <maximumf>, %40, %cst_26 [1] : vector<8x8xf32> to vector<8xf32>
    %42 = vector.shape_cast %41 : vector<8xf32> to vector<8x1xf32>
    %43 = vector.broadcast %42 : vector<8x1xf32> to vector<8x8xf32>
    %44 = arith.subf %40, %43 : vector<8x8xf32>
    %45 = math.exp %44 : vector<8x8xf32>
    %cst_27 = arith.constant dense<0.000000e+00> : vector<8xf32>
    %46 = vector.multi_reduction <add>, %45, %cst_27 [1] : vector<8x8xf32> to vector<8xf32>
    %47 = vector.shape_cast %46 : vector<8xf32> to vector<8x1xf32>
    %cst_28 = arith.constant dense<0.000000e+00> : vector<8x8xf32>
    %48 = tpu.matmul %45, %39, %cst_28 {dimension_numbers = #tpu.dot_dimension_numbers<[1], [0], [0], [1], [0, 0, 1, 1], [], []>} : vector<8x8xf32>, vector<8x8xf32>, vector<8x8xf32> -> vector<8x8xf32>
    %49 = tpu.reciprocal %47 : vector<8x1xf32> -> vector<8x1xf32>
    %50 = vector.broadcast %49 : vector<8x1xf32> to vector<8x8xf32>
    %51 = arith.mulf %48, %50 : vector<8x8xf32>
    %c0_29 = arith.constant 0 : index
    %c0_30 = arith.constant 0 : index
    %52 = vector.load %arg13[%c0_29, %c0_30] : memref<8x32xf32, #tpu.memory_space<vmem>>, vector<8x32xf32>
    %53 = arith.index_cast %c0_i32_18 : i32 to index
    %c0_31 = arith.constant 0 : index
    %c0_32 = arith.constant 0 : index
    %54 = vector.load %arg7[%53, %c0_31, %c0_32] : memref<4x8x32xf32, #tpu.memory_space<vmem>>, vector<1x8x32xf32>
    %55 = vector.shape_cast %54 : vector<1x8x32xf32> to vector<8x32xf32>
    %cst_33 = arith.constant dense<0.000000e+00> : vector<8x32xf32>
    %56 = tpu.matmul %51, %55, %cst_33 {dimension_numbers = #tpu.dot_dimension_numbers<[1], [0], [0], [1], [0, 0, 1, 1], [], []>} : vector<8x8xf32>, vector<8x32xf32>, vector<8x32xf32> -> vector<8x32xf32>
    %57 = arith.addf %52, %56 : vector<8x32xf32>
    %c0_34 = arith.constant 0 : index
    %c0_35 = arith.constant 0 : index
    %58 = vector.load %arg13[%c0_34, %c0_35] : memref<8x32xf32, #tpu.memory_space<vmem>>, vector<8x32xf32>
    tpu.vector_store %arg13[%c0_34, %c0_35], %57 {strides = array<i32>} : memref<8x32xf32, #tpu.memory_space<vmem>>, vector<8x32xf32>,
    %c1_i32 = arith.constant 1 : i32
    %59 = arith.index_cast %c1_i32 : i32 to index
    %c0_36 = arith.constant 0 : index
    %c0_37 = arith.constant 0 : index
    %60 = vector.load %arg10[%59, %c0_36, %c0_37] : memref<4x8x8xf32, #tpu.memory_space<vmem>>, vector<1x8x8xf32>
    %61 = vector.shape_cast %60 : vector<1x8x8xf32> to vector<8x8xf32>
    %62 = arith.index_cast %c1_i32 : i32 to index
    %c0_38 = arith.constant 0 : index
    %c0_39 = arith.constant 0 : index
    %63 = vector.load %arg11[%62, %c0_38, %c0_39] : memref<4x8x8xf32, #tpu.memory_space<vmem>>, vector<1x8x8xf32>
    %64 = vector.shape_cast %63 : vector<1x8x8xf32> to vector<8x8xf32>
    %65 = arith.index_cast %c1_i32 : i32 to index
    %c0_40 = arith.constant 0 : index
    %c0_41 = arith.constant 0 : index
    %66 = vector.load %arg12[%65, %c0_40, %c0_41] : memref<4x8x8xf32, #tpu.memory_space<vmem>>, vector<1x8x8xf32>
    %67 = vector.shape_cast %66 : vector<1x8x8xf32> to vector<8x8xf32>
    %cst_42 = arith.constant dense<0.000000e+00> : vector<8x8xf32>
    %68 = tpu.matmul %61, %64, %cst_42 {dimension_numbers = #tpu.dot_dimension_numbers<[1], [1], [0], [0], [0, 0, 1, 0], [], []>} : vector<8x8xf32>, vector<8x8xf32>, vector<8x8xf32> -> vector<8x8xf32>
    %cst_43 = arith.constant dense<0xFF800000> : vector<8xf32>
    %69 = vector.multi_reduction <maximumf>, %68, %cst_43 [1] : vector<8x8xf32> to vector<8xf32>
    %70 = vector.shape_cast %69 : vector<8xf32> to vector<8x1xf32>
    %71 = vector.broadcast %70 : vector<8x1xf32> to vector<8x8xf32>
    %72 = arith.subf %68, %71 : vector<8x8xf32>
    %73 = math.exp %72 : vector<8x8xf32>
    %cst_44 = arith.constant dense<0.000000e+00> : vector<8xf32>
    %74 = vector.multi_reduction <add>, %73, %cst_44 [1] : vector<8x8xf32> to vector<8xf32>
    %75 = vector.shape_cast %74 : vector<8xf32> to vector<8x1xf32>
    %cst_45 = arith.constant dense<0.000000e+00> : vector<8x8xf32>
    %76 = tpu.matmul %73, %67, %cst_45 {dimension_numbers = #tpu.dot_dimension_numbers<[1], [0], [0], [1], [0, 0, 1, 1], [], []>} : vector<8x8xf32>, vector<8x8xf32>, vector<8x8xf32> -> vector<8x8xf32>
    %77 = tpu.reciprocal %75 : vector<8x1xf32> -> vector<8x1xf32>
    %78 = vector.broadcast %77 : vector<8x1xf32> to vector<8x8xf32>
    %79 = arith.mulf %76, %78 : vector<8x8xf32>
    %c0_46 = arith.constant 0 : index
    %c0_47 = arith.constant 0 : index
    %80 = vector.load %arg13[%c0_46, %c0_47] : memref<8x32xf32, #tpu.memory_space<vmem>>, vector<8x32xf32>
    %81 = arith.index_cast %c1_i32 : i32 to index
    %c0_48 = arith.constant 0 : index
    %c0_49 = arith.constant 0 : index
    %82 = vector.load %arg7[%81, %c0_48, %c0_49] : memref<4x8x32xf32, #tpu.memory_space<vmem>>, vector<1x8x32xf32>
    %83 = vector.shape_cast %82 : vector<1x8x32xf32> to vector<8x32xf32>
    %cst_50 = arith.constant dense<0.000000e+00> : vector<8x32xf32>
    %84 = tpu.matmul %79, %83, %cst_50 {dimension_numbers = #tpu.dot_dimension_numbers<[1], [0], [0], [1], [0, 0, 1, 1], [], []>} : vector<8x8xf32>, vector<8x32xf32>, vector<8x32xf32> -> vector<8x32xf32>
    %85 = arith.addf %80, %84 : vector<8x32xf32>
    %c0_51 = arith.constant 0 : index
    %c0_52 = arith.constant 0 : index
    %86 = vector.load %arg13[%c0_51, %c0_52] : memref<8x32xf32, #tpu.memory_space<vmem>>, vector<8x32xf32>
    tpu.vector_store %arg13[%c0_51, %c0_52], %85 {strides = array<i32>} : memref<8x32xf32, #tpu.memory_space<vmem>>, vector<8x32xf32>,
    %c2_i32 = arith.constant 2 : i32
    %87 = arith.index_cast %c2_i32 : i32 to index
    %c0_53 = arith.constant 0 : index
    %c0_54 = arith.constant 0 : index
    %88 = vector.load %arg10[%87, %c0_53, %c0_54] : memref<4x8x8xf32, #tpu.memory_space<vmem>>, vector<1x8x8xf32>
    %89 = vector.shape_cast %88 : vector<1x8x8xf32> to vector<8x8xf32>
    %90 = arith.index_cast %c2_i32 : i32 to index
    %c0_55 = arith.constant 0 : index
    %c0_56 = arith.constant 0 : index
    %91 = vector.load %arg11[%90, %c0_55, %c0_56] : memref<4x8x8xf32, #tpu.memory_space<vmem>>, vector<1x8x8xf32>
    %92 = vector.shape_cast %91 : vector<1x8x8xf32> to vector<8x8xf32>
    %93 = arith.index_cast %c2_i32 : i32 to index
    %c0_57 = arith.constant 0 : index
    %c0_58 = arith.constant 0 : index
    %94 = vector.load %arg12[%93, %c0_57, %c0_58] : memref<4x8x8xf32, #tpu.memory_space<vmem>>, vector<1x8x8xf32>
    %95 = vector.shape_cast %94 : vector<1x8x8xf32> to vector<8x8xf32>
    %cst_59 = arith.constant dense<0.000000e+00> : vector<8x8xf32>
    %96 = tpu.matmul %89, %92, %cst_59 {dimension_numbers = #tpu.dot_dimension_numbers<[1], [1], [0], [0], [0, 0, 1, 0], [], []>} : vector<8x8xf32>, vector<8x8xf32>, vector<8x8xf32> -> vector<8x8xf32>
    %cst_60 = arith.constant dense<0xFF800000> : vector<8xf32>
    %97 = vector.multi_reduction <maximumf>, %96, %cst_60 [1] : vector<8x8xf32> to vector<8xf32>
    %98 = vector.shape_cast %97 : vector<8xf32> to vector<8x1xf32>
    %99 = vector.broadcast %98 : vector<8x1xf32> to vector<8x8xf32>
    %100 = arith.subf %96, %99 : vector<8x8xf32>
    %101 = math.exp %100 : vector<8x8xf32>
    %cst_61 = arith.constant dense<0.000000e+00> : vector<8xf32>
    %102 = vector.multi_reduction <add>, %101, %cst_61 [1] : vector<8x8xf32> to vector<8xf32>
    %103 = vector.shape_cast %102 : vector<8xf32> to vector<8x1xf32>
    %cst_62 = arith.constant dense<0.000000e+00> : vector<8x8xf32>
    %104 = tpu.matmul %101, %95, %cst_62 {dimension_numbers = #tpu.dot_dimension_numbers<[1], [0], [0], [1], [0, 0, 1, 1], [], []>} : vector<8x8xf32>, vector<8x8xf32>, vector<8x8xf32> -> vector<8x8xf32>
    %105 = tpu.reciprocal %103 : vector<8x1xf32> -> vector<8x1xf32>
    %106 = vector.broadcast %105 : vector<8x1xf32> to vector<8x8xf32>
    %107 = arith.mulf %104, %106 : vector<8x8xf32>
    %c0_63 = arith.constant 0 : index
    %c0_64 = arith.constant 0 : index
    %108 = vector.load %arg13[%c0_63, %c0_64] : memref<8x32xf32, #tpu.memory_space<vmem>>, vector<8x32xf32>
    %109 = arith.index_cast %c2_i32 : i32 to index
    %c0_65 = arith.constant 0 : index
    %c0_66 = arith.constant 0 : index
    %110 = vector.load %arg7[%109, %c0_65, %c0_66] : memref<4x8x32xf32, #tpu.memory_space<vmem>>, vector<1x8x32xf32>
    %111 = vector.shape_cast %110 : vector<1x8x32xf32> to vector<8x32xf32>
    %cst_67 = arith.constant dense<0.000000e+00> : vector<8x32xf32>
    %112 = tpu.matmul %107, %111, %cst_67 {dimension_numbers = #tpu.dot_dimension_numbers<[1], [0], [0], [1], [0, 0, 1, 1], [], []>} : vector<8x8xf32>, vector<8x32xf32>, vector<8x32xf32> -> vector<8x32xf32>
    %113 = arith.addf %108, %112 : vector<8x32xf32>
    %c0_68 = arith.constant 0 : index
    %c0_69 = arith.constant 0 : index
    %114 = vector.load %arg13[%c0_68, %c0_69] : memref<8x32xf32, #tpu.memory_space<vmem>>, vector<8x32xf32>
    tpu.vector_store %arg13[%c0_68, %c0_69], %113 {strides = array<i32>} : memref<8x32xf32, #tpu.memory_space<vmem>>, vector<8x32xf32>,
    %c3_i32 = arith.constant 3 : i32
    %115 = arith.index_cast %c3_i32 : i32 to index
    %c0_70 = arith.constant 0 : index
    %c0_71 = arith.constant 0 : index
    %116 = vector.load %arg10[%115, %c0_70, %c0_71] : memref<4x8x8xf32, #tpu.memory_space<vmem>>, vector<1x8x8xf32>
    %117 = vector.shape_cast %116 : vector<1x8x8xf32> to vector<8x8xf32>
    %118 = arith.index_cast %c3_i32 : i32 to index
    %c0_72 = arith.constant 0 : index
    %c0_73 = arith.constant 0 : index
    %119 = vector.load %arg11[%118, %c0_72, %c0_73] : memref<4x8x8xf32, #tpu.memory_space<vmem>>, vector<1x8x8xf32>
    %120 = vector.shape_cast %119 : vector<1x8x8xf32> to vector<8x8xf32>
    %121 = arith.index_cast %c3_i32 : i32 to index
    %c0_74 = arith.constant 0 : index
    %c0_75 = arith.constant 0 : index
    %122 = vector.load %arg12[%121, %c0_74, %c0_75] : memref<4x8x8xf32, #tpu.memory_space<vmem>>, vector<1x8x8xf32>
    %123 = vector.shape_cast %122 : vector<1x8x8xf32> to vector<8x8xf32>
    %cst_76 = arith.constant dense<0.000000e+00> : vector<8x8xf32>
    %124 = tpu.matmul %117, %120, %cst_76 {dimension_numbers = #tpu.dot_dimension_numbers<[1], [1], [0], [0], [0, 0, 1, 0], [], []>} : vector<8x8xf32>, vector<8x8xf32>, vector<8x8xf32> -> vector<8x8xf32>
    %cst_77 = arith.constant dense<0xFF800000> : vector<8xf32>
    %125 = vector.multi_reduction <maximumf>, %124, %cst_77 [1] : vector<8x8xf32> to vector<8xf32>
    %126 = vector.shape_cast %125 : vector<8xf32> to vector<8x1xf32>
    %127 = vector.broadcast %126 : vector<8x1xf32> to vector<8x8xf32>
    %128 = arith.subf %124, %127 : vector<8x8xf32>
    %129 = math.exp %128 : vector<8x8xf32>
    %cst_78 = arith.constant dense<0.000000e+00> : vector<8xf32>
    %130 = vector.multi_reduction <add>, %129, %cst_78 [1] : vector<8x8xf32> to vector<8xf32>
    %131 = vector.shape_cast %130 : vector<8xf32> to vector<8x1xf32>
    %cst_79 = arith.constant dense<0.000000e+00> : vector<8x8xf32>
    %132 = tpu.matmul %129, %123, %cst_79 {dimension_numbers = #tpu.dot_dimension_numbers<[1], [0], [0], [1], [0, 0, 1, 1], [], []>} : vector<8x8xf32>, vector<8x8xf32>, vector<8x8xf32> -> vector<8x8xf32>
    %133 = tpu.reciprocal %131 : vector<8x1xf32> -> vector<8x1xf32>
    %134 = vector.broadcast %133 : vector<8x1xf32> to vector<8x8xf32>
    %135 = arith.mulf %132, %134 : vector<8x8xf32>
    %c0_80 = arith.constant 0 : index
    %c0_81 = arith.constant 0 : index
    %136 = vector.load %arg13[%c0_80, %c0_81] : memref<8x32xf32, #tpu.memory_space<vmem>>, vector<8x32xf32>
    %137 = arith.index_cast %c3_i32 : i32 to index
    %c0_82 = arith.constant 0 : index
    %c0_83 = arith.constant 0 : index
    %138 = vector.load %arg7[%137, %c0_82, %c0_83] : memref<4x8x32xf32, #tpu.memory_space<vmem>>, vector<1x8x32xf32>
    %139 = vector.shape_cast %138 : vector<1x8x32xf32> to vector<8x32xf32>
    %cst_84 = arith.constant dense<0.000000e+00> : vector<8x32xf32>
    %140 = tpu.matmul %135, %139, %cst_84 {dimension_numbers = #tpu.dot_dimension_numbers<[1], [0], [0], [1], [0, 0, 1, 1], [], []>} : vector<8x8xf32>, vector<8x32xf32>, vector<8x32xf32> -> vector<8x32xf32>
    %141 = arith.addf %136, %140 : vector<8x32xf32>
    %c0_85 = arith.constant 0 : index
    %c0_86 = arith.constant 0 : index
    %142 = vector.load %arg13[%c0_85, %c0_86] : memref<8x32xf32, #tpu.memory_space<vmem>>, vector<8x32xf32>
    tpu.vector_store %arg13[%c0_85, %c0_86], %141 {strides = array<i32>} : memref<8x32xf32, #tpu.memory_space<vmem>>, vector<8x32xf32>,
    %c4_i32 = arith.constant 4 : i32
    %c0_87 = arith.constant 0 : index
    %c0_88 = arith.constant 0 : index
    %143 = vector.load %arg13[%c0_87, %c0_88] : memref<8x32xf32, #tpu.memory_space<vmem>>, vector<8x32xf32>
    %c0_89 = arith.constant 0 : index
    %c0_90 = arith.constant 0 : index
    %144 = vector.load %arg8[%c0_89, %c0_90] : memref<1x32xf32, #tpu.memory_space<vmem>>, vector<1x32xf32>
    %145 = vector.broadcast %144 : vector<1x32xf32> to vector<8x32xf32>
    %146 = arith.addf %143, %145 : vector<8x32xf32>
    %c0_91 = arith.constant 0 : index
    %c0_92 = arith.constant 0 : index
    %c0_93 = arith.constant 0 : index
    %147 = vector.load %arg9[%c0_91, %c0_92, %c0_93] : memref<1x8x32xf32, #tpu.memory_space<vmem>>, vector<1x8x32xf32>
    %148 = vector.shape_cast %147 : vector<1x8x32xf32> to vector<8x32xf32>
    %149 = vector.shape_cast %146 : vector<8x32xf32> to vector<1x8x32xf32>
    tpu.vector_store %arg9[%c0_91, %c0_92, %c0_93], %149 {strides = array<i32>} : memref<1x8x32xf32, #tpu.memory_space<vmem>>, vector<1x8x32xf32>,
    return
  }
  func.func @transform_0(%arg0: i32, %arg1: i32) -> (i32, i32, i32) {
    %c0_i32 = arith.constant 0 : i32
    %c0_i32_0 = arith.constant 0 : i32
    %c0_i32_1 = arith.constant 0 : i32
    return %arg0, %c0_i32, %c0_i32_0 : i32, i32, i32
  }
  func.func @transform_1(%arg0: i32, %arg1: i32) -> (i32, i32) {
    %c0_i32 = arith.constant 0 : i32
    %c0_i32_0 = arith.constant 0 : i32
    %c0_i32_1 = arith.constant 0 : i32
    return %c0_i32, %c0_i32_0 : i32, i32
  }
  func.func @transform_2(%arg0: i32, %arg1: i32) -> (i32, i32) {
    %c0_i32 = arith.constant 0 : i32
    %c0_i32_0 = arith.constant 0 : i32
    %c0_i32_1 = arith.constant 0 : i32
    return %c0_i32, %c0_i32_0 : i32, i32
  }
  func.func @transform_3(%arg0: i32, %arg1: i32) -> (i32, i32) {
    %c0_i32 = arith.constant 0 : i32
    %c0_i32_0 = arith.constant 0 : i32
    %c0_i32_1 = arith.constant 0 : i32
    return %c0_i32, %c0_i32_0 : i32, i32
  }
  func.func @transform_4(%arg0: i32, %arg1: i32) -> (i32, i32) {
    %c0_i32 = arith.constant 0 : i32
    %c0_i32_0 = arith.constant 0 : i32
    %c0_i32_1 = arith.constant 0 : i32
    return %c0_i32, %c0_i32_0 : i32, i32
  }
  func.func @transform_5(%arg0: i32, %arg1: i32) -> (i32, i32, i32) {
    %c0_i32 = arith.constant 0 : i32
    %c0_i32_0 = arith.constant 0 : i32
    %c0_i32_1 = arith.constant 0 : i32
    %c0_i32_2 = arith.constant 0 : i32
    return %c0_i32, %c0_i32_0, %c0_i32_1 : i32, i32, i32
  }
  func.func @transform_6(%arg0: i32, %arg1: i32) -> (i32, i32) {
    %c0_i32 = arith.constant 0 : i32
    %c0_i32_0 = arith.constant 0 : i32
    %c0_i32_1 = arith.constant 0 : i32
    return %c0_i32, %c0_i32_0 : i32, i32
  }
  func.func @transform_7(%arg0: i32, %arg1: i32) -> (i32, i32, i32) {
    %c0_i32 = arith.constant 0 : i32
    %c0_i32_0 = arith.constant 0 : i32
    return %arg0, %arg1, %c0_i32 : i32, i32, i32
  }
}

</mosaic_0001>

<bundles_post_ra>
// kernel: tpu_custom_call.1
= control target key start
LH: loop header
LB: loop body
LE: loop exit
PB: predicated region body
PF: predicated region fallthrough
CT: control target
= control target key end

     0   :  { %s2708_s0 = inlined_call_operand.hbm [shape: f32[2,8,32], index: 0, kind: input, shape index: {}]   ;;  %s2709_s1 = inlined_call_operand.hbm [shape: f32[32,32], index: 1, kind: input, shape index: {}]   ;;  %s2710_s2 = inlined_call_operand.hbm [shape: f32[32,32], index: 2, kind: input, shape index: {}]   ;;  %s2711_s3 = inlined_call_operand.hbm [shape: f32[32,32], index: 3, kind: input, shape index: {}]   ;;  %s2712_s4 = inlined_call_operand.vmem [shape: f32[3,32], index: 4, kind: input, shape index: {}]   ;;  %s2713_s5 = inlined_call_operand.hbm [shape: f32[4,8,32], index: 5, kind: input, shape index: {}]   ;;  %s2714_s6 = inlined_call_operand.vmem [shape: f32[1,32], index: 6, kind: input, shape index: {}]   ;;  %s2715_s7 = inlined_call_operand.hbm [shape: f32[2,8,32], index: 7, kind: output, shape index: {}]  }
   0x1   :  { %2716 = sst [smem:[#allocation20_spill]] %s2709_s1 }
   0x2   :  { %2717 = sst [smem:[#allocation21_spill]] %s2710_s2 }
   0x3   :  { %2718 = sst [smem:[#allocation22_spill]] %s2711_s3 }
   0x4   :  { %2719 = sst [smem:[#allocation23_spill]] %s2713_s5 }
   0x5   :  { %12 = vsyncpa [#allocation7], 0 }
   0x6   :  { %14 = vsyncpa [#allocation7 + $0x1], 0 }
   0x7   :  { %15 = vsyncpa [#allocation10], 0 }
   0x8   :  { %16 = vsyncpa [#allocation13], 0 }
   0x9   :  { %17 = vsyncpa [#allocation8], 0 }
   0xa   :  { %19 = vsyncpa [#allocation8 + $0x1], 0  ;;  %s2363_s24 = smov 0   ;;  %s2365_s25 = smov 0  }
   0xb   :  { %s2367_s26 = smov 0   ;;  %s2369_s27 = smov 0  }
   0xc   :  { %s2371_s28 = smov 0   ;;  %s2373_s29 = smov 0  }
   0xd LB: > { %s1786_s30 = sadd.s32 4294967295, %s2308_s29   ;;  %p1788_p0 = scmp.ge.s32.totalorder %s2308_s29, 1  ;;  %s2308_s29 = sphi %s2373_s29, %s25_s29   ;;  %s2304_s28 = sphi %s2371_s28, %s2738_s28   ;;  %s2300_s27 = sphi %s2369_s27, %s2737_s27   ;;  %s2296_s26 = sphi %s2367_s26, %s2736_s26   ;;  %s2292_s25 = sphi %s2365_s25, %s2735_s25   ;;  %s2288_s24 = sphi %s2363_s24, %s2734_s24  }
   0xe   : > { %p2397_p1 = scmp.eq.s32.totalorder %s1786_s30, 0  ;;  %p222_p2 = scmp.lt.s32.totalorder %s2308_s29, 3 }
   0xf   : > { %s2310_s10 = smov [#allocation9]   ;;  %s2311_s13 = smov [#allocation12]  }
  0x10   : > { %p2402_p3 = pnand %p1788_p0, %p222_p2  ;;  %s234_s11 = sshll.u32 %s2310_s10, 4  ;;  %s235_s11 = int_to_ptr.vmem [resolvable:$true] %s234_s11 }
  0x11   : > { %s260_s14 = sshll.u32 %s2311_s13, 4  ;;  %s2312_s15 = smov [#allocation11]   ;;  %s261_s14 = int_to_ptr.vmem [resolvable:$true] %s260_s14 }
  0x12   : > { %p1982_p4 = pneg %p2402_p3  ;;  %s247_s16 = sshll.u32 %s2312_s15, 4  ;;  %s248_s16 = int_to_ptr.vmem [resolvable:$true] %s247_s16 }
  0x13   : > { %s2099_s17 = scalar_lea.vmem %s235_s11, 512  ;;  %p2107_p11 = scmp.lt.s32.totalorder %s235_s11, %s235_s11 }
  0x14   : > { %p2411_p6 = pnand %p1982_p4, %p2397_p1  ;;  %p2100_p8 = scmp.ne.s32.totalorder %s235_s11, %s2099_s17 }
  0x15   : > { %p2108_p12 = scmp.lt.s32.totalorder %s2099_s17, %s2099_s17 }
  0x16   : > { %p2090_p7 = pneg %p2411_p6 }
  0x17   : > { %p2109_p13 = por %p2108_p12, %p2107_p11 }
  0x18   : > { %p2102_p9 = pnand %p2100_p8, %p2090_p7 }
  0x1a   : > { %p2103_p10 = pneg %p2102_p9 }
  0x1c   : > { %p2110_p0 = pnand %p2109_p13, %p2103_p10 }
  0x1e   : > { %2113 = shalt.err (!%p2110_p0)
}
  0x1f   : > { %s2313_s18 = smov 128   ;;  %s2314_s19 = smov 8  }
  0x20   : > { %s2723_s1 = sld [smem:[#allocation20_spill]]  ;;  %s2125_s22 = scalar_lea.vmem %s261_s14, 512 }
  0x21   : > { %p2126_p2 = scmp.ne.s32.totalorder %s261_s14, %s2125_s22  ;;  %p2133_p9 = scmp.lt.s32.totalorder %s261_s14, %s261_s14 }
  0x22   : > { %p2134_p10 = scmp.lt.s32.totalorder %s2125_s22, %s2125_s22 }
  0x23   : > { %p2128_p4 = pnand %p2126_p2, %p2090_p7 }
  0x24   : > { %p2135_p11 = por %p2134_p10, %p2133_p9 }
  0x25   : > { %p2129_p8 = pneg %p2128_p4 }
  0x26   : > { %1985 = dma.hbm_to_vmem [thread:$0]  (!%p2411_p6), %s2723_s1, 512, %s235_s11, [#allocation10], %s2313_s18, %s2313_s18, %s2314_s19  }
  0x27   : > { %p2136_p12 = pnand %p2135_p11, %p2129_p8 }
  0x29   : > { %2139 = shalt.err (!%p2136_p12)
}
  0x2a   : > { %s2724_s3 = sld [smem:[#allocation22_spill]]  ;;  %s2151_s11 = scalar_lea.vmem %s248_s16, 512 }
  0x2b   : > { %p2152_p13 = scmp.ne.s32.totalorder %s248_s16, %s2151_s11  ;;  %p2159_p4 = scmp.lt.s32.totalorder %s248_s16, %s248_s16 }
  0x2c   : > { %p2160_p8 = scmp.lt.s32.totalorder %s2151_s11, %s2151_s11 }
  0x2d   : > { %p2154_p0 = pnand %p2152_p13, %p2090_p7 }
  0x2e   : > { %p2161_p9 = por %p2160_p8, %p2159_p4 }
  0x2f   : > { %p2155_p2 = pneg %p2154_p0 }
  0x30   : > { %1991 = dma.hbm_to_vmem [thread:$0]  (!%p2411_p6), %s2724_s3, 512, %s261_s14, [#allocation13], %s2313_s18, %s2313_s18, %s2314_s19  }
  0x31   : > { %p2162_p10 = pnand %p2161_p9, %p2155_p2 }
  0x33   : > { %2165 = shalt.err (!%p2162_p10)
}
  0x34   : > { %s2725_s2 = sld [smem:[#allocation21_spill]]  ;;  %s2315_s14 = smov [#allocation14]  }
  0x35   : > { %s276_s17 = sshll.u32 %s2315_s14, 4  ;;  %s277_s17 = int_to_ptr.vmem [resolvable:$true] %s276_s17 }
  0x36   : > { %s2177_s20 = scalar_lea.vmem %s277_s17, 512  ;;  %p2185_p0 = scmp.lt.s32.totalorder %s277_s17, %s277_s17 }
  0x37   : > { %p2178_p11 = scmp.ne.s32.totalorder %s277_s17, %s2177_s20  ;;  %p2186_p2 = scmp.lt.s32.totalorder %s2177_s20, %s2177_s20 }
  0x39   : > { %p2180_p12 = pnand %p2178_p11, %p2090_p7  ;;  %p2187_p4 = por %p2186_p2, %p2185_p0 }
  0x3a   : > { %1988 = dma.hbm_to_vmem [thread:$0]  (!%p2411_p6), %s2725_s2, 512, %s248_s16, [#allocation10], %s2313_s18, %s2313_s18, %s2314_s19  }
  0x3b   : > { %p2181_p13 = pneg %p2180_p12 }
  0x3d   : > { %p2188_p8 = pnand %p2187_p4, %p2181_p13 }
  0x3f   : > { %2191 = shalt.err (!%p2188_p8)
}
  0x40   : > { %s2726_s5 = sld [smem:[#allocation23_spill]]  ;;  %s1787_s12 = sadd.s32 4294967294, %s2308_s29  }
  0x41   : > { %s37_s22 = sadd.s32 1, %s2304_s28  ;;  %s44_s23 = sadd.s32 1, %s2296_s26 }
  0x42   : > { %p39_p7 = scmp.ge.s32.totalorder %s37_s22, 2  ;;  %p51_p9 = scmp.ne.s32.totalorder %s2296_s26, %s2292_s25 }
  0x43   : > { %p52_p10 = scmp.eq.s32.totalorder %s2308_s29, 0  ;;  %p57_p12 = scmp.ne.s32.totalorder %s2292_s25, %s2288_s24 }
  0x44   : > { %s2740_s22 = smov (%p39_p7, %s37_s22), 0  ;;  %p215_p4 = scmp.eq.s32.totalorder %s1787_s12, 1 }
  0x45   : > { %p2469_p11 = por %p52_p10, %p51_p9  ;;  %p2481_p0 = por %p2397_p1, %p57_p12 }
  0x46   : > { %1994 = dma.hbm_to_vmem [thread:$0]  (!%p2411_p6), %s2726_s5, 512, %s277_s17, [#allocation13], %s2313_s18, %s2313_s18, %s2314_s19  }
  0x47   : > { %s41_s18 = ssub.s32 %s2304_s28, %s2740_s22  ;;  %p209_p6 = scmp.eq.s32.totalorder %s1786_s30, 1 }
  0x48   : > { %p42_p13 = scmp.eq.s32.totalorder %s41_s18, 0  ;;  %p2492_p8 = por %p215_p4, %p57_p12 }
  0x49   : > { %p2485_p2 = por %p209_p6, %p51_p9  ;;  %p2007_p7 = scmp.lt.s32.totalorder %s2308_s29, 2 }
  0x4a   : > { %s2490_s13 = scalar_select %p42_p13, %s2296_s26, %s44_s23  }
  0x4b   : > { %s2730_s15 = scalar_select %p2492_p8, 1, 0 }
  0x4c   : > { %s293_s14 = sand.u32 1, %s2296_s26   ;;  %s1795_s30 = sshll.u32 %s2304_s28, 7 }
  0x4d   : > { %s1794_s17 = sshll.u32 %s293_s14, 3  ;;  %s302_s21 = scalar_lea.hbm %s2708_s0, %s1795_s30 }
  0x4e   : > { %s297_s18 = scalar_lea.vmem [#allocation6], %s1794_s17  ;;  %p2504_p9 = pnand %p2007_p7, %p2469_p11 }
  0x4f   : > { %s304_s1 = sshll.u32 %s297_s18, 4  ;;  %s294_s12 = scalar_lea.sflag [#allocation7], %s293_s14  ;;  %s305_s1 = int_to_ptr.vmem [resolvable:$true] %s304_s1 }
  0x50   : > { %p2194_p10 = pneg %p2504_p9  ;;  %s2205_s23 = scalar_lea.vmem %s305_s1, 128 }
  0x51   : > { %p2206_p12 = scmp.ne.s32.totalorder %s305_s1, %s2205_s23  ;;  %s2316_s3 = smov [#allocation6]  }
  0x52   : > { %s2210_s5 = sshll.u32 %s2316_s3, 4  ;;  %s2211_s5 = int_to_ptr.vmem [resolvable:$false] %s2210_s5 }
  0x53   : > { %p2208_p6 = pnand %p2206_p12, %p2194_p10  ;;  %s2212_s30 = scalar_lea.vmem %s2211_s5, 256 }
  0x54   : > { %p2213_p4 = scmp.lt.s32.totalorder %s305_s1, %s2211_s5  ;;  %p2214_p5 = scmp.lt.s32.totalorder %s2212_s30, %s2205_s23 }
  0x55   : > { %p2209_p13 = pneg %p2208_p6 }
  0x56   : > { %p2215_p8 = por %p2214_p5, %p2213_p4 }
  0x58   : > { %p2216_p11 = pnand %p2215_p8, %p2209_p13 }
  0x5a   : > { %2219 = shalt.err (!%p2216_p11)
}
  0x5b   : > { %1998 = dma.hbm_to_vmem [thread:$0]  (!%p2504_p9), %s302_s21, 128, %s305_s1, %s294_s12  }
  0x5c   : > { %313 = sbr.rel (%p2402_p3) target bundleno = 2148 (0x864), region = 48  ;;  %s2515_s10 = sand.u32 (!%p2402_p3), 1, %s2292_s25  }
  0x5d   : > { %s1797_s3 = sshll.u32 (!%p2402_p3), %s2515_s10, 3  ;;  %s316_s14 = scalar_lea.sflag (!%p2402_p3), [#allocation7], %s2515_s10 }
  0x5e   : > { %s319_s5 = scalar_lea.vmem (!%p2402_p3), [#allocation6], %s1797_s3 }
  0x61   : > { %2271 = dma.done.wait (%p2481_p0), %s316_s14, 128  }
  0x62   : > { %2273 = vsyncadd (%p2481_p0), %s316_s14, 4294967168 }
  0x63   : > { %2275 = dma.done.wait (%p2397_p1), [#allocation10], 1024  }
  0x64   : > { %2277 = vsyncadd (%p2397_p1), [#allocation10], 4294966272 }
  0x65   : > { %2279 = dma.done.wait (%p2397_p1), [#allocation13], 1024  }
  0x66   : > { %2281 = vsyncadd (%p2397_p1), [#allocation13], 4294966272  ;;  %vm380_vm0 = vcmask 261120   ;;  %v2317_v0 = vmov 0.0   ;;  %vm2318_vm1 = vmmov 0   ;;  %v374_v1 = vld [vmem:[#allocation11 + $0x18] sm:$0xff] }
  0x67   : > { %1869 = vmatprep.subr.mxu0 %v2317_v0  ;;  %1877 = vmatprep.mubr.msk.f32.mxu0 %vm2318_vm1, %v2317_v0  ;;  %672 = vst.msk [vmem:[#allocation5] sm:$0xff] %vm380_vm0, %v2317_v0  ;;  %v373_v2 = vld [vmem:[#allocation11 + $0x10] sm:$0xff]  ;;  %v372_v3 = vld [vmem:[#allocation11 + $0x8] sm:$0xff]  ;;  %v371_v4 = vld [vmem:[#allocation11] sm:$0xff]  ;;  %vm533_vm2 = vcmask 64512   ;;  %s2319_s19 = smov 120  }
  0x68   : > { %1880 = vmatprep.subr.mxu1 %v2317_v0  ;;  %1888 = vmatprep.mubr.msk.f32.mxu1 %vm2318_vm1, %v2317_v0  ;;  %v370_v5 = vld [vmem:[%s319_s5] sm:$0xff]  ;;  %v572_v8 = vld [vmem:[#allocation9 + $0x8] sm:$0xff]  ;;  %v571_v9 = vld [vmem:[#allocation9] sm:$0xff]  ;;  %s2320_s16 = smov 112   ;;  %s2321_s21 = smov 104  }
  0x69   : > { %1870 = vmatpush3.msra.mxu0 %v374_v1  ;;  %v574_v6 = vld [vmem:[#allocation9 + $0x18] sm:$0xff]  ;;  %v573_v7 = vld [vmem:[#allocation9 + $0x10] sm:$0xff]  ;;  %v455_v12 = vld [vmem:[#allocation12 + $0x8] sm:$0xff]  ;;  %s1827_s23 = sshll.u32 %s2300_s27, 7  ;;  %s365_s30 = scalar_lea.vmem [#allocation15], %s1797_s3 }
  0x6a   : > { %1871 = vmatprep.subr.mxu0 %v2317_v0  ;;  %v457_v10 = vld [vmem:[#allocation12 + $0x18] sm:$0xff]  ;;  %v456_v11 = vld [vmem:[#allocation12 + $0x10] sm:$0xff]  ;;  %v454_v13 = vld [vmem:[#allocation12] sm:$0xff]  ;;  %s1667_s14 = sshll.u32 %s365_s30, 4  ;;  %s1665_s2 = scalar_lea.hbm %s2715_s7, %s1827_s23  ;;  %s1668_s14 = int_to_ptr.vmem [resolvable:$true] %s1667_s14 }
  0x6b   : > { %1872 = vmatpush3.msra.mxu0 %v373_v2  ;;  %1881 = vmatpush3.msra.mxu1 %v457_v10  ;;  %v1803_v14 = vld [vmem:[%s2712_s4 + $0x1] ss:$0 sm:$0xff]  ;;  %v1807_v18 = vld [vmem:[%s2712_s4] ss:$0 sm:$0xff]  ;;  %v1805_v24 = vld [vmem:[%s2712_s4 + $0x2] ss:$0 sm:$0xff] }
  0x6c   : > { %1873 = vmatprep.subr.mxu0 %v2317_v0  ;;  %1882 = vmatprep.subr.mxu1 %v2317_v0  ;;  %v837_v42 = vld [vmem:[#allocation14] sm:$0xff]  ;;  %s1653_s8 = scalar_lea.sflag [#allocation8], %s2515_s10  ;;  %s2220_s9 = scalar_lea.vmem %s1668_s14, 128 }
  0x6d   : > { %1874 = vmatpush3.msra.mxu0 %v372_v3  ;;  %1883 = vmatpush3.msra.mxu1 %v456_v11  ;;  %v1080_v3 = vld [vmem:[#allocation14 + $0x8] sm:$0xff]  ;;  %p2221_p1 = scmp.ne.s32.totalorder %s1668_s14, %s2220_s9 }
  0x6e   : > { %1875 = vmatprep.subr.mxu0 %v2317_v0  ;;  %1884 = vmatprep.subr.mxu1 %v2317_v0  ;;  %v836_v62 = vld [vmem:[#allocation5] sm:$0xff] }
  0x6f   : > { %1876 = vmatpush3.msra.mxu0 %v371_v4  ;;  %1885 = vmatpush3.msra.mxu1 %v455_v12  ;;  %p2222_p3 = pnand %p2221_p1, %p2485_p2 }
  0x70   : > { %1878 = vmatmul.mubr.msk.f32.vlgmr.msra.gmra.mxu0 %vm380_vm0, %v370_v5  ;;  %1891 = vmatprep.subr.mxu0 %v2317_v0 }
  0x71   : > { %1892 = vmatpush3.msra.mxu0 %v574_v6  ;;  %1899 = vmatprep.mubr.msk.f32.mxu0 %vm2318_vm1, %v2317_v0  ;;  %p2223_p5 = pneg %p2222_p3 }
  0x72   : > { %1893 = vmatprep.subr.mxu0 %v2317_v0  ;;  %1886 = vmatprep.subr.mxu1 %v2317_v0 }
  0x73   : > { %1894 = vmatpush3.msra.mxu0 %v573_v7  ;;  %1887 = vmatpush3.msra.mxu1 %v454_v13 }
  0x74   : > { %1895 = vmatprep.subr.mxu0 %v2317_v0  ;;  %1902 = vmatprep.subr.mxu1 %v2317_v0 }
  0x75   : > { %1896 = vmatpush3.msra.mxu0 %v572_v8  ;;  %1889 = vmatmul.mubr.msk.f32.vlgmr.msra.gmra.mxu1 %vm380_vm0, %v370_v5 }
  0x76   : > { %1897 = vmatprep.subr.mxu0 %v2317_v0  ;;  %1904 = vmatprep.mubr.msk.f32.mxu1 %vm2318_vm1, %v2317_v0 }
  0x77   : > { %1898 = vmatpush3.msra.mxu0 %v571_v9 }
  0x78   : > { %1900 = vmatmul.mubr.msk.f32.vlgmr.msra.gmra.mxu0 %vm380_vm0, %v370_v5  ;;  %1912 = vmatprep.subr.mxu0 %v2317_v0 }
  0x79   : > { %1914 = vmatprep.mubr.msk.f32.mxu0 %vm2318_vm1, %v2317_v0  ;;  %1913 = vmatpush3.msra.mxu0 %v837_v42  ;;  %v1566_v42 = vld [vmem:[#allocation14 + $0x18] sm:$0xff] }
  0x7a   : > { %1922 = vmatprep.subr.mxu0 %v2317_v0 }
 0x130   : > { %v450_v15 = vpop.f32.mrf.mxu0 }
 0x131   : > { %v2565_v16 = vadd.f32 %v1803_v14, %v450_v15 }
 0x132   : > { %v1879_v17 = vpop.f32.mrf.mxu0 }
 0x133   : > { %534 = vst.msk [vmem:[#allocation3] sm:$0xff] %vm533_vm2, %v2565_v16 }
 0x135   : > { %v529_v25 = vpop.f32.mrf.mxu1 }
 0x136   : > { %v2585_v26 = vadd.f32 %v1805_v24, %v529_v25 }
 0x137   : > { %v1890_v27 = vpop.f32.mrf.mxu1 }
 0x138   : > { %v650_v19 = vpop.f32.mrf.mxu0  ;;  %535 = vst.msk [vmem:[#allocation4] sm:$0xff] %vm533_vm2, %v2585_v26  ;;  %v1323_v27 = vld [vmem:[#allocation14 + $0x10] sm:$0xff] }
 0x139   : > { %v2572_v20 = vadd.f32 %v1807_v18, %v650_v19 }
 0x13a   : > { %v1901_v21 = vpop.f32.mrf.mxu0  ;;  %v674_v22 = vld [vmem:[#allocation3] sm:$0xff] }
 0x13b   : > { %655 = vst.msk [vmem:[#allocation2] sm:$0xff] %vm533_vm2, %v2572_v20  ;;  %657 = vrot.lane.b32.xlu1 %v2572_v20, %s2319_s19  ;;  %1903 = vmatpush3.xpose.msk.msra.mxu1 %vm533_vm2, %v674_v22 }
 0x13c   : > { %1907 = vmatprep.subr.mxu1 %v2317_v0 }
 0x13f   : > { %543 = vrot.lane.b32.xlu1 %v2585_v26, %s2319_s19  ;;  %v675_v28 = vld [vmem:[#allocation4] sm:$0xff] }
 0x142   : > { %v673_v23 = vld [vmem:[#allocation2] sm:$0xff] }
 0x143   : > { %1905 = vmatmul.mubr.msk.f32.vlgmr.msra.gmra.mxu1 %vm533_vm2, %v673_v23 }
 0x144   : > { %1909 = vmatprep.mubr.msk.f32.mxu1 %vm2318_vm1, %v2317_v0  ;;  %1908 = vmatpush3.msra.mxu1 %v675_v28 }
 0x145   : > { %1917 = vmatprep.subr.mxu1 %v2317_v0 }
 0x1ad   : > { %v658_v29 = vpop.permute.xlu1 %657 }
 0x1ae   : > { %661 = vst.msk [vmem:[#allocation2 + $0x8] sm:$0xff] %vm533_vm2, %v658_v29 }
 0x1b1   : > { %v544_v30 = vpop.permute.xlu1 %543 }
 0x1b2   : > { %547 = vst.msk [vmem:[#allocation4 + $0x8] sm:$0xff] %vm533_vm2, %v544_v30 }
 0x1b5   : > { %v913_v41 = vld [vmem:[#allocation2 + $0x8] sm:$0xff] }
 0x1b9   : > { %v917_v50 = vld [vmem:[#allocation4 + $0x8] sm:$0xff] }
 0x203   : > { %v748_v31 = vpop.f32.mrf.mxu1 }
 0x204   : > { %v752_v32 = vsel %vm533_vm2, %v748_v31, -inf }
 0x205   : > { %753 = vmax.xlane.f32.xlu0 %v752_v32  ;;  %v1906_v33 = vpop.f32.mrf.mxu1 }
 0x21b   : > { %537 = vrot.lane.b32.xlu0 %v2565_v16, %s2319_s19  ;;  %s2322_s19 = smov [#allocation15]  }
 0x21c   : > { %s2224_s27 = sshll.u32 %s2322_s19, 4  ;;  %s2225_s27 = int_to_ptr.vmem [resolvable:$false] %s2224_s27 }
 0x21d   : > { %s2226_s3 = scalar_lea.vmem %s2225_s27, 256  ;;  %p2227_p0 = scmp.lt.s32.totalorder %s1668_s14, %s2225_s27 }
 0x21e   : > { %p2228_p8 = scmp.lt.s32.totalorder %s2226_s3, %s2220_s9 }
 0x220   : > { %p2229_p7 = por %p2228_p8, %p2227_p0 }
 0x222   : > { %p2230_p9 = pnand %p2229_p7, %p2223_p5 }
 0x28e   : > { %v754_v34 = vpop.xlane.xlu0 %753 }
 0x28f   : > { %v755_v35 = vsub.f32 %v748_v31, %v754_v34 }
 0x291   : > { %v756_v36 = vmul.f32 1.442695, %v755_v35 }
 0x292   : > { %v538_v37 = vpop.permute.xlu0 %537 }
 0x293   : > { %2072 = vpow2.f32 %v756_v36  ;;  %541 = vst.msk [vmem:[#allocation3 + $0x8] sm:$0xff] %vm533_vm2, %v538_v37 }
 0x29a   : > { %v915_v39 = vld [vmem:[#allocation3 + $0x8] sm:$0xff] }
 0x2a0   : > { %v2073_v38 = vpop.eup %2072 }
 0x2a1   : > { %1910 = vmatmul.mubr.msk.f32.vlgmr.msra.gmra.mxu1 %vm533_vm2, %v2073_v38  ;;  %v758_v40 = vsel %vm533_vm2, %v2073_v38, 0.0 }
 0x2a2   : > { %1918 = vmatpush3.xpose.msk.msra.mxu1 %vm533_vm2, %v915_v39  ;;  %759 = vadd.xlane.f32.xlu1 %v758_v40 }
 0x2a3   : > { %1919 = vmatprep.mubr.msk.f32.mxu1 %vm2318_vm1, %v2317_v0  ;;  %1927 = vmatprep.subr.mxu1 %v2317_v0 }
 0x2a5   : > { %1920 = vmatmul.mubr.msk.f32.vlgmr.msra.gmra.mxu1 %vm533_vm2, %v913_v41 }
 0x2a6   : > { %1929 = vmatprep.mubr.msk.f32.mxu1 %vm2318_vm1, %v2317_v0  ;;  %1928 = vmatpush3.msra.mxu1 %v1080_v3 }
 0x2a7   : > { %1937 = vmatprep.subr.mxu1 %v2317_v0 }
 0x2b3   : > { %662 = vrot.lane.b32.xlu1 %v2572_v20, %s2320_s16 }
 0x2b7   : > { %553 = vrot.lane.b32.xlu1 %v2585_v26, %s2320_s16 }
 0x32b   : > { %v760_v43 = vpop.xlane.xlu1 %759 }
 0x32c   : > { %2074 = vrcp.f32 %v760_v43 }
 0x32f   : > { %v663_v44 = vpop.permute.xlu1 %662 }
 0x330   : > { %666 = vst.msk [vmem:[#allocation2 + $0x10] sm:$0xff] %vm533_vm2, %v663_v44 }
 0x333   : > { %v554_v45 = vpop.permute.xlu1 %553 }
 0x334   : > { %557 = vst.msk [vmem:[#allocation4 + $0x10] sm:$0xff] %vm533_vm2, %v554_v45 }
 0x337   : > { %v1156_v61 = vld [vmem:[#allocation2 + $0x10] sm:$0xff] }
 0x339   : > { %v2075_v46 = vpop.eup %2074 }
 0x33b   : > { %v1160_v10 = vld [vmem:[#allocation4 + $0x10] sm:$0xff] }
 0x361   : > { %v830_v47 = vpop.f32.mrf.mxu1 }
 0x362   : > { %v835_v48 = vmul.f32 %v2075_v46, %v830_v47 }
 0x363   : > { %v1911_v49 = vpop.f32.mrf.mxu1 }
 0x364   : > { %1915 = vmatmul.mubr.msk.f32.vlgmr.msra.gmra.mxu0 %vm533_vm2, %v835_v48 }
 0x365   : > { %1923 = vmatpush3.msra.mxu0 %v917_v50  ;;  %v990_v51 = vpop.f32.mrf.mxu1  ;;  %1924 = vmatprep.mubr.msk.f32.mxu0 %vm2318_vm1, %v2317_v0 }
 0x366   : > { %v994_v52 = vsel %vm533_vm2, %v990_v51, -inf  ;;  %1932 = vmatprep.subr.mxu0 %v2317_v0 }
 0x367   : > { %995 = vmax.xlane.f32.xlu0 %v994_v52  ;;  %v1921_v53 = vpop.f32.mrf.mxu1 }
 0x37d   : > { %548 = vrot.lane.b32.xlu0 %v2565_v16, %s2320_s16 }
 0x3f0   : > { %v996_v54 = vpop.xlane.xlu0 %995 }
 0x3f1   : > { %v997_v55 = vsub.f32 %v990_v51, %v996_v54 }
 0x3f3   : > { %v998_v56 = vmul.f32 1.442695, %v997_v55  ;;  %v1825_v55 = vld [vmem:[%s2714_s6] ss:$0 sm:$0xff] }
 0x3f4   : > { %v549_v57 = vpop.permute.xlu0 %548 }
 0x3f5   : > { %2076 = vpow2.f32 %v998_v56  ;;  %552 = vst.msk [vmem:[#allocation3 + $0x10] sm:$0xff] %vm533_vm2, %v549_v57 }
 0x3fc   : > { %v1158_v59 = vld [vmem:[#allocation3 + $0x10] sm:$0xff] }
 0x402   : > { %v2077_v58 = vpop.eup %2076 }
 0x403   : > { %1925 = vmatmul.mubr.msk.f32.vlgmr.msra.gmra.mxu0 %vm533_vm2, %v2077_v58  ;;  %v1000_v60 = vsel %vm533_vm2, %v2077_v58, 0.0 }
 0x404   : > { %1933 = vmatpush3.xpose.msk.msra.mxu0 %vm533_vm2, %v1158_v59  ;;  %1001 = vadd.xlane.f32.xlu1 %v1000_v60 }
 0x405   : > { %1934 = vmatprep.mubr.msk.f32.mxu0 %vm2318_vm1, %v2317_v0  ;;  %1942 = vmatprep.subr.mxu0 %v2317_v0 }
 0x407   : > { %1935 = vmatmul.mubr.msk.f32.vlgmr.msra.gmra.mxu0 %vm533_vm2, %v1156_v61 }
 0x408   : > { %1944 = vmatprep.mubr.msk.f32.mxu0 %vm2318_vm1, %v2317_v0  ;;  %1943 = vmatpush3.msra.mxu0 %v1323_v27 }
 0x409   : > { %1952 = vmatprep.subr.mxu0 %v2317_v0 }
 0x415   : > { %667 = vrot.lane.b32.xlu1 %v2572_v20, %s2321_s21 }
 0x424   : > { %v907_v63 = vpop.f32.mrf.mxu0 }
 0x425   : > { %v911_v1 = vadd.f32 %v907_v63, %v836_v62 }
 0x426   : > { %v1916_v2 = vpop.f32.mrf.mxu0 }
 0x427   : > { %912 = vst.msk [vmem:[#allocation5] sm:$0xff] %vm380_vm0, %v911_v1 }
 0x42e   : > { %v1078_v22 = vld [vmem:[#allocation5] sm:$0xff] }
 0x48d   : > { %v1002_v4 = vpop.xlane.xlu1 %1001 }
 0x48e   : > { %2078 = vrcp.f32 %v1002_v4 }
 0x491   : > { %v668_v5 = vpop.permute.xlu1 %667 }
 0x492   : > { %671 = vst.msk [vmem:[#allocation2 + $0x18] sm:$0xff] %vm533_vm2, %v668_v5 }
 0x49b   : > { %v2079_v6 = vpop.eup %2078 }
 0x4c3   : > { %v1072_v7 = vpop.f32.mrf.mxu0 }
 0x4c4   : > { %v1077_v8 = vmul.f32 %v2079_v6, %v1072_v7 }
 0x4c5   : > { %v1926_v9 = vpop.f32.mrf.mxu0 }
 0x4c6   : > { %1930 = vmatmul.mubr.msk.f32.vlgmr.msra.gmra.mxu1 %vm533_vm2, %v1077_v8 }
 0x4c7   : > { %1938 = vmatpush3.msra.mxu1 %v1160_v10  ;;  %v1233_v11 = vpop.f32.mrf.mxu0  ;;  %1939 = vmatprep.mubr.msk.f32.mxu1 %vm2318_vm1, %v2317_v0 }
 0x4c8   : > { %v1237_v12 = vsel %vm533_vm2, %v1233_v11, -inf  ;;  %1947 = vmatprep.subr.mxu1 %v2317_v0 }
 0x4c9   : > { %1238 = vmax.xlane.f32.xlu0 %v1237_v12  ;;  %v1936_v13 = vpop.f32.mrf.mxu0 }
 0x4df   : > { %558 = vrot.lane.b32.xlu0 %v2565_v16, %s2321_s21  ;;  %v1399_v16 = vld [vmem:[#allocation2 + $0x18] sm:$0xff] }
 0x552   : > { %v1239_v14 = vpop.xlane.xlu0 %1238 }
 0x553   : > { %v1240_v15 = vsub.f32 %v1233_v11, %v1239_v14 }
 0x555   : > { %v1241_v17 = vmul.f32 1.442695, %v1240_v15 }
 0x556   : > { %v559_v18 = vpop.permute.xlu0 %558 }
 0x557   : > { %2080 = vpow2.f32 %v1241_v17  ;;  %562 = vst.msk [vmem:[#allocation3 + $0x18] sm:$0xff] %vm533_vm2, %v559_v18 }
 0x55e   : > { %v1401_v20 = vld [vmem:[#allocation3 + $0x18] sm:$0xff] }
 0x564   : > { %v2081_v19 = vpop.eup %2080 }
 0x565   : > { %1940 = vmatmul.mubr.msk.f32.vlgmr.msra.gmra.mxu1 %vm533_vm2, %v2081_v19  ;;  %v1243_v21 = vsel %vm533_vm2, %v2081_v19, 0.0 }
 0x566   : > { %1948 = vmatpush3.xpose.msk.msra.mxu1 %vm533_vm2, %v1401_v20  ;;  %1244 = vadd.xlane.f32.xlu1 %v1243_v21 }
 0x567   : > { %1949 = vmatprep.mubr.msk.f32.mxu1 %vm2318_vm1, %v2317_v0  ;;  %1957 = vmatprep.subr.mxu1 %v2317_v0 }
 0x569   : > { %1950 = vmatmul.mubr.msk.f32.vlgmr.msra.gmra.mxu1 %vm533_vm2, %v1399_v16 }
 0x56a   : > { %1959 = vmatprep.mubr.msk.f32.mxu1 %vm2318_vm1, %v2317_v0  ;;  %1958 = vmatpush3.msra.mxu1 %v1566_v42 }
 0x577   : > { %563 = vrot.lane.b32.xlu1 %v2585_v26, %s2321_s21 }
 0x586   : > { %v1150_v23 = vpop.f32.mrf.mxu1 }
 0x587   : > { %v1154_v24 = vadd.f32 %v1150_v23, %v1078_v22 }
 0x588   : > { %v1931_v25 = vpop.f32.mrf.mxu1 }
 0x589   : > { %1155 = vst.msk [vmem:[#allocation5] sm:$0xff] %vm380_vm0, %v1154_v24 }
 0x590   : > { %v1321_v43 = vld [vmem:[#allocation5] sm:$0xff] }
 0x5ef   : > { %v1245_v28 = vpop.xlane.xlu1 %1244 }
 0x5f0   : > { %2082 = vrcp.f32 %v1245_v28 }
 0x5f3   : > { %v564_v29 = vpop.permute.xlu1 %563 }
 0x5f4   : > { %567 = vst.msk [vmem:[#allocation4 + $0x18] sm:$0xff] %vm533_vm2, %v564_v29 }
 0x5fb   : > { %v1403_v26 = vld [vmem:[#allocation4 + $0x18] sm:$0xff] }
 0x5fd   : > { %v2083_v30 = vpop.eup %2082 }
 0x625   : > { %v1315_v31 = vpop.f32.mrf.mxu1 }
 0x626   : > { %v1320_v32 = vmul.f32 %v2083_v30, %v1315_v31 }
 0x627   : > { %v1941_v33 = vpop.f32.mrf.mxu1 }
 0x628   : > { %1945 = vmatmul.mubr.msk.f32.vlgmr.msra.gmra.mxu0 %vm533_vm2, %v1320_v32 }
 0x629   : > { %1953 = vmatpush3.msra.mxu0 %v1403_v26  ;;  %v1476_v34 = vpop.f32.mrf.mxu1  ;;  %1954 = vmatprep.mubr.msk.f32.mxu0 %vm2318_vm1, %v2317_v0 }
 0x62a   : > { %v1480_v35 = vsel %vm533_vm2, %v1476_v34, -inf }
 0x62b   : > { %1481 = vmax.xlane.f32.xlu0 %v1480_v35  ;;  %v1951_v36 = vpop.f32.mrf.mxu1 }
 0x6b4   : > { %v1482_v37 = vpop.xlane.xlu0 %1481 }
 0x6b5   : > { %v1483_v38 = vsub.f32 %v1476_v34, %v1482_v37 }
 0x6b7   : > { %v1484_v39 = vmul.f32 1.442695, %v1483_v38 }
 0x6b9   : > { %2084 = vpow2.f32 %v1484_v39 }
 0x6c6   : > { %v2085_v40 = vpop.eup %2084 }
 0x6c7   : > { %1955 = vmatmul.mubr.msk.f32.vlgmr.msra.gmra.mxu0 %vm533_vm2, %v2085_v40  ;;  %v1486_v41 = vsel %vm533_vm2, %v2085_v40, 0.0 }
 0x6c8   : > { %1487 = vadd.xlane.f32.xlu0 %v1486_v41 }
 0x6e8   : > { %v1393_v44 = vpop.f32.mrf.mxu0 }
 0x6e9   : > { %v1397_v45 = vadd.f32 %v1393_v44, %v1321_v43 }
 0x6ea   : > { %v1946_v0 = vpop.f32.mrf.mxu0 }
 0x6eb   : > { %1398 = vst.msk [vmem:[#allocation5] sm:$0xff] %vm380_vm0, %v1397_v45 }
 0x6f2   : > { %v1564_v51 = vld [vmem:[#allocation5] sm:$0xff] }
 0x751   : > { %v1488_v46 = vpop.xlane.xlu0 %1487 }
 0x752   : > { %2086 = vrcp.f32 %v1488_v46 }
 0x75f   : > { %v2087_v47 = vpop.eup %2086 }
 0x787   : > { %v1558_v48 = vpop.f32.mrf.mxu0 }
 0x788   : > { %v1563_v49 = vmul.f32 %v2087_v47, %v1558_v48 }
 0x789   : > { %v1956_v50 = vpop.f32.mrf.mxu0 }
 0x78a   : > { %1960 = vmatmul.mubr.msk.f32.vlgmr.msra.gmra.mxu1 %vm533_vm2, %v1563_v49 }
 0x84a   : > { %v1636_v52 = vpop.f32.mrf.mxu1 }
 0x84b   : > { %v1640_v53 = vadd.f32 %v1636_v52, %v1564_v51 }
 0x84c   : > { %v1961_v54 = vpop.f32.mrf.mxu1 }
 0x84d   : > { %1641 = vst.msk [vmem:[#allocation5] sm:$0xff] %vm380_vm0, %v1640_v53 }
 0x854   : > { %v1642_v56 = vld [vmem:[#allocation5] sm:$0xff] }
 0x855   : > { %v1650_v57 = vadd.f32 %v1825_v55, %v1642_v56 }
 0x857   : > { %1651 = vst.msk [vmem:[%s365_s30] sm:$0xff] %vm380_vm0, %v1650_v57 }
 0x858   : > { %2233 = shalt.err (!%p2230_p9)
}
 0x859   : > { %s2234_s17 = scalar_lea.hbm %s1665_s2, 128  ;;  %s2238_s16 = scalar_lea.hbm %s2715_s7, 256 }
 0x85a   : > { %p2235_p10 = scmp.ne.s32.totalorder %s1665_s2, %s2234_s17  ;;  %p2239_p13 = scmp.lt.s32.totalorder %s1665_s2, %s2715_s7 }
 0x85b   : > { %p2240_p4 = scmp.lt.s32.totalorder %s2238_s16, %s2234_s17 }
 0x85c   : > { %p2236_p12 = pnand %p2235_p10, %p2485_p2 }
 0x85d   : > { %p2241_p11 = por %p2240_p4, %p2239_p13 }
 0x85e   : > { %p2237_p6 = pneg %p2236_p12 }
 0x860   : > { %p2242_p1 = pnand %p2241_p11, %p2237_p6 }
 0x862   : > { %2245 = shalt.err (!%p2242_p1)
}
 0x863   : > { %1980 = dma.vmem_to_hbm [thread:$0]  (%p2485_p2), %s1668_s14, 128, %s1665_s2, %s1653_s8  }
 0x864 PF: > { %s1679_s12 = sand.u32 1, %s2288_s24   ;;  %p2732_p3 = scmp.ne.s32.totalorder %s2730_s15, 0 }
 0x865   : > { %p2733_p5 = scmp.ge.s32.totalorder %s2308_s29, 2  ;;  %s1680_s23 = scalar_lea.sflag [#allocation8], %s1679_s12 }
 0x867   : > { %p2000_p0 = pnand %p2733_p5, %p2732_p3 }
 0x869   : > { %p2001_p8 = pneg %p2000_p0 }
 0x86b   : > { %2283 = dma.done.wait (%p2001_p8), %s1680_s23, 128  }
 0x86c   : > { %2285 = vsyncadd (%p2001_p8), %s1680_s23, 4294967168  ;;  %s25_s29 = sadd.s32 1, %s2308_s29   ;;  %s2734_s24 = smov %s2292_s25 }
 0x86d   : > { %p22_p7 = scmp.ge.s32.totalorder %s25_s29, 4   ;;  %s2735_s25 = smov %s2296_s26 }
 0x86e   : > { %s2736_s26 = smov %s2490_s13  ;;  %s2737_s27 = smov %s2304_s28 }
 0x86f   : > { %s2738_s28 = smov %s2740_s22  ;;  %24 = sbr.rel (!%p22_p7) target bundleno = 13 (0xd), region = 132 }
 0x874   :  { %1685 = vsyncpa [#allocation7], 1 }
 0x875   :  { %1687 = vsyncpa [#allocation7 + $0x1], 1 }
 0x876   :  { %1688 = vsyncpa [#allocation10], 1 }
 0x877   :  { %1689 = vsyncpa [#allocation13], 1 }
 0x878   :  { %1690 = vsyncpa [#allocation8], 1 }
 0x879   :  { %1692 = vsyncpa [#allocation8 + $0x1], 1 }

// kernel: tpu_custom_call.1
= control target key start
LH: loop header
LB: loop body
LE: loop exit
PB: predicated region body
PF: predicated region fallthrough
CT: control target
= control target key end

     0   :  { %s2708_s0 = inlined_call_operand.hbm [shape: f32[2,8,32], index: 0, kind: input, shape index: {}]   ;;  %s2709_s1 = inlined_call_operand.hbm [shape: f32[32,32], index: 1, kind: input, shape index: {}]   ;;  %s2710_s2 = inlined_call_operand.hbm [shape: f32[32,32], index: 2, kind: input, shape index: {}]   ;;  %s2711_s3 = inlined_call_operand.hbm [shape: f32[32,32], index: 3, kind: input, shape index: {}]   ;;  %s2712_s4 = inlined_call_operand.vmem [shape: f32[3,32], index: 4, kind: input, shape index: {}]   ;;  %s2713_s5 = inlined_call_operand.hbm [shape: f32[4,8,32], index: 5, kind: input, shape index: {}]   ;;  %s2714_s6 = inlined_call_operand.vmem [shape: f32[1,32], index: 6, kind: input, shape index: {}]   ;;  %s2715_s7 = inlined_call_operand.hbm [shape: f32[2,8,32], index: 7, kind: output, shape index: {}]  }
   0x1   :  { %2716 = sst [smem:[#allocation20_spill]] %s2709_s1 }
   0x2   :  { %2717 = sst [smem:[#allocation21_spill]] %s2710_s2 }
   0x3   :  { %2718 = sst [smem:[#allocation22_spill]] %s2711_s3 }
   0x4   :  { %2719 = sst [smem:[#allocation23_spill]] %s2713_s5 }
   0x5   :  { %12 = vsyncpa [#allocation7], 0 }
   0x6   :  { %14 = vsyncpa [#allocation7 + $0x1], 0 }
   0x7   :  { %15 = vsyncpa [#allocation10], 0 }
   0x8   :  { %16 = vsyncpa [#allocation13], 0 }
   0x9   :  { %17 = vsyncpa [#allocation8], 0 }
   0xa   :  { %19 = vsyncpa [#allocation8 + $0x1], 0  ;;  %s2363_s24 = smov 0   ;;  %s2365_s25 = smov 0  }
   0xb   :  { %s2367_s26 = smov 0   ;;  %s2369_s27 = smov 0  }
   0xc   :  { %s2371_s28 = smov 0   ;;  %s2373_s29 = smov 0  }
   0xd LB: > { %s1786_s30 = sadd.s32 4294967295, %s2308_s29   ;;  %p1788_p0 = scmp.ge.s32.totalorder %s2308_s29, 1  ;;  %s2308_s29 = sphi %s2373_s29, %s25_s29   ;;  %s2304_s28 = sphi %s2371_s28, %s2738_s28   ;;  %s2300_s27 = sphi %s2369_s27, %s2737_s27   ;;  %s2296_s26 = sphi %s2367_s26, %s2736_s26   ;;  %s2292_s25 = sphi %s2365_s25, %s2735_s25   ;;  %s2288_s24 = sphi %s2363_s24, %s2734_s24  }
   0xe   : > { %p2397_p1 = scmp.eq.s32.totalorder %s1786_s30, 0  ;;  %p222_p2 = scmp.lt.s32.totalorder %s2308_s29, 3 }
   0xf   : > { %s2310_s10 = smov [#allocation9]   ;;  %s2311_s13 = smov [#allocation12]  }
  0x10   : > { %p2402_p3 = pnand %p1788_p0, %p222_p2  ;;  %s234_s11 = sshll.u32 %s2310_s10, 4  ;;  %s235_s11 = int_to_ptr.vmem [resolvable:$true] %s234_s11 }
  0x11   : > { %s260_s14 = sshll.u32 %s2311_s13, 4  ;;  %s2312_s15 = smov [#allocation11]   ;;  %s261_s14 = int_to_ptr.vmem [resolvable:$true] %s260_s14 }
  0x12   : > { %p1982_p4 = pneg %p2402_p3  ;;  %s247_s16 = sshll.u32 %s2312_s15, 4  ;;  %s248_s16 = int_to_ptr.vmem [resolvable:$true] %s247_s16 }
  0x13   : > { %s2099_s17 = scalar_lea.vmem %s235_s11, 512  ;;  %p2107_p11 = scmp.lt.s32.totalorder %s235_s11, %s235_s11 }
  0x14   : > { %p2411_p6 = pnand %p1982_p4, %p2397_p1  ;;  %p2100_p8 = scmp.ne.s32.totalorder %s235_s11, %s2099_s17 }
  0x15   : > { %p2108_p12 = scmp.lt.s32.totalorder %s2099_s17, %s2099_s17 }
  0x16   : > { %p2090_p7 = pneg %p2411_p6 }
  0x17   : > { %p2109_p13 = por %p2108_p12, %p2107_p11 }
  0x18   : > { %p2102_p9 = pnand %p2100_p8, %p2090_p7 }
  0x1a   : > { %p2103_p10 = pneg %p2102_p9 }
  0x1c   : > { %p2110_p0 = pnand %p2109_p13, %p2103_p10 }
  0x1e   : > { %2113 = shalt.err (!%p2110_p0)
}
  0x1f   : > { %s2313_s18 = smov 128   ;;  %s2314_s19 = smov 8  }
  0x20   : > { %s2723_s1 = sld [smem:[#allocation20_spill]]  ;;  %s2125_s22 = scalar_lea.vmem %s261_s14, 512 }
  0x21   : > { %p2126_p2 = scmp.ne.s32.totalorder %s261_s14, %s2125_s22  ;;  %p2133_p9 = scmp.lt.s32.totalorder %s261_s14, %s261_s14 }
  0x22   : > { %p2134_p10 = scmp.lt.s32.totalorder %s2125_s22, %s2125_s22 }
  0x23   : > { %p2128_p4 = pnand %p2126_p2, %p2090_p7 }
  0x24   : > { %p2135_p11 = por %p2134_p10, %p2133_p9 }
  0x25   : > { %p2129_p8 = pneg %p2128_p4 }
  0x26   : > { %1985 = dma.hbm_to_vmem [thread:$0]  (!%p2411_p6), %s2723_s1, 512, %s235_s11, [#allocation10], %s2313_s18, %s2313_s18, %s2314_s19  }
  0x27   : > { %p2136_p12 = pnand %p2135_p11, %p2129_p8 }
  0x29   : > { %2139 = shalt.err (!%p2136_p12)
}
  0x2a   : > { %s2724_s3 = sld [smem:[#allocation22_spill]]  ;;  %s2151_s11 = scalar_lea.vmem %s248_s16, 512 }
  0x2b   : > { %p2152_p13 = scmp.ne.s32.totalorder %s248_s16, %s2151_s11  ;;  %p2159_p4 = scmp.lt.s32.totalorder %s248_s16, %s248_s16 }
  0x2c   : > { %p2160_p8 = scmp.lt.s32.totalorder %s2151_s11, %s2151_s11 }
  0x2d   : > { %p2154_p0 = pnand %p2152_p13, %p2090_p7 }
  0x2e   : > { %p2161_p9 = por %p2160_p8, %p2159_p4 }
  0x2f   : > { %p2155_p2 = pneg %p2154_p0 }
  0x30   : > { %1991 = dma.hbm_to_vmem [thread:$0]  (!%p2411_p6), %s2724_s3, 512, %s261_s14, [#allocation13], %s2313_s18, %s2313_s18, %s2314_s19  }
  0x31   : > { %p2162_p10 = pnand %p2161_p9, %p2155_p2 }
  0x33   : > { %2165 = shalt.err (!%p2162_p10)
}
  0x34   : > { %s2725_s2 = sld [smem:[#allocation21_spill]]  ;;  %s2315_s14 = smov [#allocation14]  }
  0x35   : > { %s276_s17 = sshll.u32 %s2315_s14, 4  ;;  %s277_s17 = int_to_ptr.vmem [resolvable:$true] %s276_s17 }
  0x36   : > { %s2177_s20 = scalar_lea.vmem %s277_s17, 512  ;;  %p2185_p0 = scmp.lt.s32.totalorder %s277_s17, %s277_s17 }
  0x37   : > { %p2178_p11 = scmp.ne.s32.totalorder %s277_s17, %s2177_s20  ;;  %p2186_p2 = scmp.lt.s32.totalorder %s2177_s20, %s2177_s20 }
  0x39   : > { %p2180_p12 = pnand %p2178_p11, %p2090_p7  ;;  %p2187_p4 = por %p2186_p2, %p2185_p0 }
  0x3a   : > { %1988 = dma.hbm_to_vmem [thread:$0]  (!%p2411_p6), %s2725_s2, 512, %s248_s16, [#allocation10], %s2313_s18, %s2313_s18, %s2314_s19  }
  0x3b   : > { %p2181_p13 = pneg %p2180_p12 }
  0x3d   : > { %p2188_p8 = pnand %p2187_p4, %p2181_p13 }
  0x3f   : > { %2191 = shalt.err (!%p2188_p8)
}
  0x40   : > { %s2726_s5 = sld [smem:[#allocation23_spill]]  ;;  %s1787_s12 = sadd.s32 4294967294, %s2308_s29  }
  0x41   : > { %s37_s22 = sadd.s32 1, %s2304_s28  ;;  %s44_s23 = sadd.s32 1, %s2296_s26 }
  0x42   : > { %p39_p7 = scmp.ge.s32.totalorder %s37_s22, 2  ;;  %p51_p9 = scmp.ne.s32.totalorder %s2296_s26, %s2292_s25 }
  0x43   : > { %p52_p10 = scmp.eq.s32.totalorder %s2308_s29, 0  ;;  %p57_p12 = scmp.ne.s32.totalorder %s2292_s25, %s2288_s24 }
  0x44   : > { %s2740_s22 = smov (%p39_p7, %s37_s22), 0  ;;  %p215_p4 = scmp.eq.s32.totalorder %s1787_s12, 1 }
  0x45   : > { %p2469_p11 = por %p52_p10, %p51_p9  ;;  %p2481_p0 = por %p2397_p1, %p57_p12 }
  0x46   : > { %1994 = dma.hbm_to_vmem [thread:$0]  (!%p2411_p6), %s2726_s5, 512, %s277_s17, [#allocation13], %s2313_s18, %s2313_s18, %s2314_s19  }
  0x47   : > { %s41_s18 = ssub.s32 %s2304_s28, %s2740_s22  ;;  %p209_p6 = scmp.eq.s32.totalorder %s1786_s30, 1 }
  0x48   : > { %p42_p13 = scmp.eq.s32.totalorder %s41_s18, 0  ;;  %p2492_p8 = por %p215_p4, %p57_p12 }
  0x49   : > { %p2485_p2 = por %p209_p6, %p51_p9  ;;  %p2007_p7 = scmp.lt.s32.totalorder %s2308_s29, 2 }
  0x4a   : > { %s2490_s13 = scalar_select %p42_p13, %s2296_s26, %s44_s23  }
  0x4b   : > { %s2730_s15 = scalar_select %p2492_p8, 1, 0 }
  0x4c   : > { %s293_s14 = sand.u32 1, %s2296_s26   ;;  %s1795_s30 = sshll.u32 %s2304_s28, 7 }
  0x4d   : > { %s1794_s17 = sshll.u32 %s293_s14, 3  ;;  %s302_s21 = scalar_lea.hbm %s2708_s0, %s1795_s30 }
  0x4e   : > { %s297_s18 = scalar_lea.vmem [#allocation6], %s1794_s17  ;;  %p2504_p9 = pnand %p2007_p7, %p2469_p11 }
  0x4f   : > { %s304_s1 = sshll.u32 %s297_s18, 4  ;;  %s294_s12 = scalar_lea.sflag [#allocation7], %s293_s14  ;;  %s305_s1 = int_to_ptr.vmem [resolvable:$true] %s304_s1 }
  0x50   : > { %p2194_p10 = pneg %p2504_p9  ;;  %s2205_s23 = scalar_lea.vmem %s305_s1, 128 }
  0x51   : > { %p2206_p12 = scmp.ne.s32.totalorder %s305_s1, %s2205_s23  ;;  %s2316_s3 = smov [#allocation6]  }
  0x52   : > { %s2210_s5 = sshll.u32 %s2316_s3, 4  ;;  %s2211_s5 = int_to_ptr.vmem [resolvable:$false] %s2210_s5 }
  0x53   : > { %p2208_p6 = pnand %p2206_p12, %p2194_p10  ;;  %s2212_s30 = scalar_lea.vmem %s2211_s5, 256 }
  0x54   : > { %p2213_p4 = scmp.lt.s32.totalorder %s305_s1, %s2211_s5  ;;  %p2214_p5 = scmp.lt.s32.totalorder %s2212_s30, %s2205_s23 }
  0x55   : > { %p2209_p13 = pneg %p2208_p6 }
  0x56   : > { %p2215_p8 = por %p2214_p5, %p2213_p4 }
  0x58   : > { %p2216_p11 = pnand %p2215_p8, %p2209_p13 }
  0x5a   : > { %2219 = shalt.err (!%p2216_p11)
}
  0x5b   : > { %1998 = dma.hbm_to_vmem [thread:$0]  (!%p2504_p9), %s302_s21, 128, %s305_s1, %s294_s12  }
  0x5c   : > { %313 = sbr.rel (%p2402_p3) target bundleno = 2148 (0x864), region = 48  ;;  %s2515_s10 = sand.u32 (!%p2402_p3), 1, %s2292_s25  }
  0x5d   : > { %s1797_s3 = sshll.u32 (!%p2402_p3), %s2515_s10, 3  ;;  %s316_s14 = scalar_lea.sflag (!%p2402_p3), [#allocation7], %s2515_s10 }
  0x5e   : > { %s319_s5 = scalar_lea.vmem (!%p2402_p3), [#allocation6], %s1797_s3 }
  0x61   : > { %2271 = dma.done.wait (%p2481_p0), %s316_s14, 128  }
  0x62   : > { %2273 = vsyncadd (%p2481_p0), %s316_s14, 4294967168 }
  0x63   : > { %2275 = dma.done.wait (%p2397_p1), [#allocation10], 1024  }
  0x64   : > { %2277 = vsyncadd (%p2397_p1), [#allocation10], 4294966272 }
  0x65   : > { %2279 = dma.done.wait (%p2397_p1), [#allocation13], 1024  }
  0x66   : > { %2281 = vsyncadd (%p2397_p1), [#allocation13], 4294966272  ;;  %vm380_vm0 = vcmask 261120   ;;  %v2317_v0 = vmov 0.0   ;;  %vm2318_vm1 = vmmov 0   ;;  %v374_v1 = vld [vmem:[#allocation11 + $0x18] sm:$0xff] }
  0x67   : > { %1869 = vmatprep.subr.mxu0 %v2317_v0  ;;  %1877 = vmatprep.mubr.msk.f32.mxu0 %vm2318_vm1, %v2317_v0  ;;  %672 = vst.msk [vmem:[#allocation5] sm:$0xff] %vm380_vm0, %v2317_v0  ;;  %v373_v2 = vld [vmem:[#allocation11 + $0x10] sm:$0xff]  ;;  %v372_v3 = vld [vmem:[#allocation11 + $0x8] sm:$0xff]  ;;  %v371_v4 = vld [vmem:[#allocation11] sm:$0xff]  ;;  %vm533_vm2 = vcmask 64512   ;;  %s2319_s19 = smov 120  }
  0x68   : > { %1880 = vmatprep.subr.mxu1 %v2317_v0  ;;  %1888 = vmatprep.mubr.msk.f32.mxu1 %vm2318_vm1, %v2317_v0  ;;  %v370_v5 = vld [vmem:[%s319_s5] sm:$0xff]  ;;  %v572_v8 = vld [vmem:[#allocation9 + $0x8] sm:$0xff]  ;;  %v571_v9 = vld [vmem:[#allocation9] sm:$0xff]  ;;  %s2320_s16 = smov 112   ;;  %s2321_s21 = smov 104  }
  0x69   : > { %1870 = vmatpush3.msra.mxu0 %v374_v1  ;;  %v574_v6 = vld [vmem:[#allocation9 + $0x18] sm:$0xff]  ;;  %v573_v7 = vld [vmem:[#allocation9 + $0x10] sm:$0xff]  ;;  %v455_v12 = vld [vmem:[#allocation12 + $0x8] sm:$0xff]  ;;  %s1827_s23 = sshll.u32 %s2300_s27, 7  ;;  %s365_s30 = scalar_lea.vmem [#allocation15], %s1797_s3 }
  0x6a   : > { %1871 = vmatprep.subr.mxu0 %v2317_v0  ;;  %v457_v10 = vld [vmem:[#allocation12 + $0x18] sm:$0xff]  ;;  %v456_v11 = vld [vmem:[#allocation12 + $0x10] sm:$0xff]  ;;  %v454_v13 = vld [vmem:[#allocation12] sm:$0xff]  ;;  %s1667_s14 = sshll.u32 %s365_s30, 4  ;;  %s1665_s2 = scalar_lea.hbm %s2715_s7, %s1827_s23  ;;  %s1668_s14 = int_to_ptr.vmem [resolvable:$true] %s1667_s14 }
  0x6b   : > { %1872 = vmatpush3.msra.mxu0 %v373_v2  ;;  %1881 = vmatpush3.msra.mxu1 %v457_v10  ;;  %v1803_v14 = vld [vmem:[%s2712_s4 + $0x1] ss:$0 sm:$0xff]  ;;  %v1807_v18 = vld [vmem:[%s2712_s4] ss:$0 sm:$0xff]  ;;  %v1805_v24 = vld [vmem:[%s2712_s4 + $0x2] ss:$0 sm:$0xff] }
  0x6c   : > { %1873 = vmatprep.subr.mxu0 %v2317_v0  ;;  %1882 = vmatprep.subr.mxu1 %v2317_v0  ;;  %v837_v42 = vld [vmem:[#allocation14] sm:$0xff]  ;;  %s1653_s8 = scalar_lea.sflag [#allocation8], %s2515_s10  ;;  %s2220_s9 = scalar_lea.vmem %s1668_s14, 128 }
  0x6d   : > { %1874 = vmatpush3.msra.mxu0 %v372_v3  ;;  %1883 = vmatpush3.msra.mxu1 %v456_v11  ;;  %v1080_v3 = vld [vmem:[#allocation14 + $0x8] sm:$0xff]  ;;  %p2221_p1 = scmp.ne.s32.totalorder %s1668_s14, %s2220_s9 }
  0x6e   : > { %1875 = vmatprep.subr.mxu0 %v2317_v0  ;;  %1884 = vmatprep.subr.mxu1 %v2317_v0  ;;  %v836_v62 = vld [vmem:[#allocation5] sm:$0xff] }
  0x6f   : > { %1876 = vmatpush3.msra.mxu0 %v371_v4  ;;  %1885 = vmatpush3.msra.mxu1 %v455_v12  ;;  %p2222_p3 = pnand %p2221_p1, %p2485_p2 }
  0x70   : > { %1878 = vmatmul.mubr.msk.f32.vlgmr.msra.gmra.mxu0 %vm380_vm0, %v370_v5  ;;  %1891 = vmatprep.subr.mxu0 %v2317_v0 }
  0x71   : > { %1892 = vmatpush3.msra.mxu0 %v574_v6  ;;  %1899 = vmatprep.mubr.msk.f32.mxu0 %vm2318_vm1, %v2317_v0  ;;  %p2223_p5 = pneg %p2222_p3 }
  0x72   : > { %1893 = vmatprep.subr.mxu0 %v2317_v0  ;;  %1886 = vmatprep.subr.mxu1 %v2317_v0 }
  0x73   : > { %1894 = vmatpush3.msra.mxu0 %v573_v7  ;;  %1887 = vmatpush3.msra.mxu1 %v454_v13 }
  0x74   : > { %1895 = vmatprep.subr.mxu0 %v2317_v0  ;;  %1902 = vmatprep.subr.mxu1 %v2317_v0 }
  0x75   : > { %1896 = vmatpush3.msra.mxu0 %v572_v8  ;;  %1889 = vmatmul.mubr.msk.f32.vlgmr.msra.gmra.mxu1 %vm380_vm0, %v370_v5 }
  0x76   : > { %1897 = vmatprep.subr.mxu0 %v2317_v0  ;;  %1904 = vmatprep.mubr.msk.f32.mxu1 %vm2318_vm1, %v2317_v0 }
  0x77   : > { %1898 = vmatpush3.msra.mxu0 %v571_v9 }
  0x78   : > { %1900 = vmatmul.mubr.msk.f32.vlgmr.msra.gmra.mxu0 %vm380_vm0, %v370_v5  ;;  %1912 = vmatprep.subr.mxu0 %v2317_v0 }
  0x79   : > { %1914 = vmatprep.mubr.msk.f32.mxu0 %vm2318_vm1, %v2317_v0  ;;  %1913 = vmatpush3.msra.mxu0 %v837_v42  ;;  %v1566_v42 = vld [vmem:[#allocation14 + $0x18] sm:$0xff] }
  0x7a   : > { %1922 = vmatprep.subr.mxu0 %v2317_v0 }
 0x130   : > { %v450_v15 = vpop.f32.mrf.mxu0 }
 0x131   : > { %v2565_v16 = vadd.f32 %v1803_v14, %v450_v15 }
 0x132   : > { %v1879_v17 = vpop.f32.mrf.mxu0 }
 0x133   : > { %534 = vst.msk [vmem:[#allocation3] sm:$0xff] %vm533_vm2, %v2565_v16 }
 0x135   : > { %v529_v25 = vpop.f32.mrf.mxu1 }
 0x136   : > { %v2585_v26 = vadd.f32 %v1805_v24, %v529_v25 }
 0x137   : > { %v1890_v27 = vpop.f32.mrf.mxu1 }
 0x138   : > { %v650_v19 = vpop.f32.mrf.mxu0  ;;  %535 = vst.msk [vmem:[#allocation4] sm:$0xff] %vm533_vm2, %v2585_v26  ;;  %v1323_v27 = vld [vmem:[#allocation14 + $0x10] sm:$0xff] }
 0x139   : > { %v2572_v20 = vadd.f32 %v1807_v18, %v650_v19 }
 0x13a   : > { %v1901_v21 = vpop.f32.mrf.mxu0  ;;  %v674_v22 = vld [vmem:[#allocation3] sm:$0xff] }
 0x13b   : > { %655 = vst.msk [vmem:[#allocation2] sm:$0xff] %vm533_vm2, %v2572_v20  ;;  %657 = vrot.lane.b32.xlu1 %v2572_v20, %s2319_s19  ;;  %1903 = vmatpush3.xpose.msk.msra.mxu1 %vm533_vm2, %v674_v22 }
 0x13c   : > { %1907 = vmatprep.subr.mxu1 %v2317_v0 }
 0x13f   : > { %543 = vrot.lane.b32.xlu1 %v2585_v26, %s2319_s19  ;;  %v675_v28 = vld [vmem:[#allocation4] sm:$0xff] }
 0x142   : > { %v673_v23 = vld [vmem:[#allocation2] sm:$0xff] }
 0x143   : > { %1905 = vmatmul.mubr.msk.f32.vlgmr.msra.gmra.mxu1 %vm533_vm2, %v673_v23 }
 0x144   : > { %1909 = vmatprep.mubr.msk.f32.mxu1 %vm2318_vm1, %v2317_v0  ;;  %1908 = vmatpush3.msra.mxu1 %v675_v28 }
 0x145   : > { %1917 = vmatprep.subr.mxu1 %v2317_v0 }
 0x1ad   : > { %v658_v29 = vpop.permute.xlu1 %657 }
 0x1ae   : > { %661 = vst.msk [vmem:[#allocation2 + $0x8] sm:$0xff] %vm533_vm2, %v658_v29 }
 0x1b1   : > { %v544_v30 = vpop.permute.xlu1 %543 }
 0x1b2   : > { %547 = vst.msk [vmem:[#allocation4 + $0x8] sm:$0xff] %vm533_vm2, %v544_v30 }
 0x1b5   : > { %v913_v41 = vld [vmem:[#allocation2 + $0x8] sm:$0xff] }
 0x1b9   : > { %v917_v50 = vld [vmem:[#allocation4 + $0x8] sm:$0xff] }
 0x203   : > { %v748_v31 = vpop.f32.mrf.mxu1 }
 0x204   : > { %v752_v32 = vsel %vm533_vm2, %v748_v31, -inf }
 0x205   : > { %753 = vmax.xlane.f32.xlu0 %v752_v32  ;;  %v1906_v33 = vpop.f32.mrf.mxu1 }
 0x21b   : > { %537 = vrot.lane.b32.xlu0 %v2565_v16, %s2319_s19  ;;  %s2322_s19 = smov [#allocation15]  }
 0x21c   : > { %s2224_s27 = sshll.u32 %s2322_s19, 4  ;;  %s2225_s27 = int_to_ptr.vmem [resolvable:$false] %s2224_s27 }
 0x21d   : > { %s2226_s3 = scalar_lea.vmem %s2225_s27, 256  ;;  %p2227_p0 = scmp.lt.s32.totalorder %s1668_s14, %s2225_s27 }
 0x21e   : > { %p2228_p8 = scmp.lt.s32.totalorder %s2226_s3, %s2220_s9 }
 0x220   : > { %p2229_p7 = por %p2228_p8, %p2227_p0 }
 0x222   : > { %p2230_p9 = pnand %p2229_p7, %p2223_p5 }
 0x28e   : > { %v754_v34 = vpop.xlane.xlu0 %753 }
 0x28f   : > { %v755_v35 = vsub.f32 %v748_v31, %v754_v34 }
 0x291   : > { %v756_v36 = vmul.f32 1.442695, %v755_v35 }
 0x292   : > { %v538_v37 = vpop.permute.xlu0 %537 }
 0x293   : > { %2072 = vpow2.f32 %v756_v36  ;;  %541 = vst.msk [vmem:[#allocation3 + $0x8] sm:$0xff] %vm533_vm2, %v538_v37 }
 0x29a   : > { %v915_v39 = vld [vmem:[#allocation3 + $0x8] sm:$0xff] }
 0x2a0   : > { %v2073_v38 = vpop.eup %2072 }
 0x2a1   : > { %1910 = vmatmul.mubr.msk.f32.vlgmr.msra.gmra.mxu1 %vm533_vm2, %v2073_v38  ;;  %v758_v40 = vsel %vm533_vm2, %v2073_v38, 0.0 }
 0x2a2   : > { %1918 = vmatpush3.xpose.msk.msra.mxu1 %vm533_vm2, %v915_v39  ;;  %759 = vadd.xlane.f32.xlu1 %v758_v40 }
 0x2a3   : > { %1919 = vmatprep.mubr.msk.f32.mxu1 %vm2318_vm1, %v2317_v0  ;;  %1927 = vmatprep.subr.mxu1 %v2317_v0 }
 0x2a5   : > { %1920 = vmatmul.mubr.msk.f32.vlgmr.msra.gmra.mxu1 %vm533_vm2, %v913_v41 }
 0x2a6   : > { %1929 = vmatprep.mubr.msk.f32.mxu1 %vm2318_vm1, %v2317_v0  ;;  %1928 = vmatpush3.msra.mxu1 %v1080_v3 }
 0x2a7   : > { %1937 = vmatprep.subr.mxu1 %v2317_v0 }
 0x2b3   : > { %662 = vrot.lane.b32.xlu1 %v2572_v20, %s2320_s16 }
 0x2b7   : > { %553 = vrot.lane.b32.xlu1 %v2585_v26, %s2320_s16 }
 0x32b   : > { %v760_v43 = vpop.xlane.xlu1 %759 }
 0x32c   : > { %2074 = vrcp.f32 %v760_v43 }
 0x32f   : > { %v663_v44 = vpop.permute.xlu1 %662 }
 0x330   : > { %666 = vst.msk [vmem:[#allocation2 + $0x10] sm:$0xff] %vm533_vm2, %v663_v44 }
 0x333   : > { %v554_v45 = vpop.permute.xlu1 %553 }
 0x334   : > { %557 = vst.msk [vmem:[#allocation4 + $0x10] sm:$0xff] %vm533_vm2, %v554_v45 }
 0x337   : > { %v1156_v61 = vld [vmem:[#allocation2 + $0x10] sm:$0xff] }
 0x339   : > { %v2075_v46 = vpop.eup %2074 }
 0x33b   : > { %v1160_v10 = vld [vmem:[#allocation4 + $0x10] sm:$0xff] }
 0x361   : > { %v830_v47 = vpop.f32.mrf.mxu1 }
 0x362   : > { %v835_v48 = vmul.f32 %v2075_v46, %v830_v47 }
 0x363   : > { %v1911_v49 = vpop.f32.mrf.mxu1 }
 0x364   : > { %1915 = vmatmul.mubr.msk.f32.vlgmr.msra.gmra.mxu0 %vm533_vm2, %v835_v48 }
 0x365   : > { %1923 = vmatpush3.msra.mxu0 %v917_v50  ;;  %v990_v51 = vpop.f32.mrf.mxu1  ;;  %1924 = vmatprep.mubr.msk.f32.mxu0 %vm2318_vm1, %v2317_v0 }
 0x366   : > { %v994_v52 = vsel %vm533_vm2, %v990_v51, -inf  ;;  %1932 = vmatprep.subr.mxu0 %v2317_v0 }
 0x367   : > { %995 = vmax.xlane.f32.xlu0 %v994_v52  ;;  %v1921_v53 = vpop.f32.mrf.mxu1 }
 0x37d   : > { %548 = vrot.lane.b32.xlu0 %v2565_v16, %s2320_s16 }
 0x3f0   : > { %v996_v54 = vpop.xlane.xlu0 %995 }
 0x3f1   : > { %v997_v55 = vsub.f32 %v990_v51, %v996_v54 }
 0x3f3   : > { %v998_v56 = vmul.f32 1.442695, %v997_v55  ;;  %v1825_v55 = vld [vmem:[%s2714_s6] ss:$0 sm:$0xff] }
 0x3f4   : > { %v549_v57 = vpop.permute.xlu0 %548 }
 0x3f5   : > { %2076 = vpow2.f32 %v998_v56  ;;  %552 = vst.msk [vmem:[#allocation3 + $0x10] sm:$0xff] %vm533_vm2, %v549_v57 }
 0x3fc   : > { %v1158_v59 = vld [vmem:[#allocation3 + $0x10] sm:$0xff] }
 0x402   : > { %v2077_v58 = vpop.eup %2076 }
 0x403   : > { %1925 = vmatmul.mubr.msk.f32.vlgmr.msra.gmra.mxu0 %vm533_vm2, %v2077_v58  ;;  %v1000_v60 = vsel %vm533_vm2, %v2077_v58, 0.0 }
 0x404   : > { %1933 = vmatpush3.xpose.msk.msra.mxu0 %vm533_vm2, %v1158_v59  ;;  %1001 = vadd.xlane.f32.xlu1 %v1000_v60 }
 0x405   : > { %1934 = vmatprep.mubr.msk.f32.mxu0 %vm2318_vm1, %v2317_v0  ;;  %1942 = vmatprep.subr.mxu0 %v2317_v0 }
 0x407   : > { %1935 = vmatmul.mubr.msk.f32.vlgmr.msra.gmra.mxu0 %vm533_vm2, %v1156_v61 }
 0x408   : > { %1944 = vmatprep.mubr.msk.f32.mxu0 %vm2318_vm1, %v2317_v0  ;;  %1943 = vmatpush3.msra.mxu0 %v1323_v27 }
 0x409   : > { %1952 = vmatprep.subr.mxu0 %v2317_v0 }
 0x415   : > { %667 = vrot.lane.b32.xlu1 %v2572_v20, %s2321_s21 }
 0x424   : > { %v907_v63 = vpop.f32.mrf.mxu0 }
 0x425   : > { %v911_v1 = vadd.f32 %v907_v63, %v836_v62 }
 0x426   : > { %v1916_v2 = vpop.f32.mrf.mxu0 }
 0x427   : > { %912 = vst.msk [vmem:[#allocation5] sm:$0xff] %vm380_vm0, %v911_v1 }
 0x42e   : > { %v1078_v22 = vld [vmem:[#allocation5] sm:$0xff] }
 0x48d   : > { %v1002_v4 = vpop.xlane.xlu1 %1001 }
 0x48e   : > { %2078 = vrcp.f32 %v1002_v4 }
 0x491   : > { %v668_v5 = vpop.permute.xlu1 %667 }
 0x492   : > { %671 = vst.msk [vmem:[#allocation2 + $0x18] sm:$0xff] %vm533_vm2, %v668_v5 }
 0x49b   : > { %v2079_v6 = vpop.eup %2078 }
 0x4c3   : > { %v1072_v7 = vpop.f32.mrf.mxu0 }
 0x4c4   : > { %v1077_v8 = vmul.f32 %v2079_v6, %v1072_v7 }
 0x4c5   : > { %v1926_v9 = vpop.f32.mrf.mxu0 }
 0x4c6   : > { %1930 = vmatmul.mubr.msk.f32.vlgmr.msra.gmra.mxu1 %vm533_vm2, %v1077_v8 }
 0x4c7   : > { %1938 = vmatpush3.msra.mxu1 %v1160_v10  ;;  %v1233_v11 = vpop.f32.mrf.mxu0  ;;  %1939 = vmatprep.mubr.msk.f32.mxu1 %vm2318_vm1, %v2317_v0 }
 0x4c8   : > { %v1237_v12 = vsel %vm533_vm2, %v1233_v11, -inf  ;;  %1947 = vmatprep.subr.mxu1 %v2317_v0 }
 0x4c9   : > { %1238 = vmax.xlane.f32.xlu0 %v1237_v12  ;;  %v1936_v13 = vpop.f32.mrf.mxu0 }
 0x4df   : > { %558 = vrot.lane.b32.xlu0 %v2565_v16, %s2321_s21  ;;  %v1399_v16 = vld [vmem:[#allocation2 + $0x18] sm:$0xff] }
 0x552   : > { %v1239_v14 = vpop.xlane.xlu0 %1238 }
 0x553   : > { %v1240_v15 = vsub.f32 %v1233_v11, %v1239_v14 }
 0x555   : > { %v1241_v17 = vmul.f32 1.442695, %v1240_v15 }
 0x556   : > { %v559_v18 = vpop.permute.xlu0 %558 }
 0x557   : > { %2080 = vpow2.f32 %v1241_v17  ;;  %562 = vst.msk [vmem:[#allocation3 + $0x18] sm:$0xff] %vm533_vm2, %v559_v18 }
 0x55e   : > { %v1401_v20 = vld [vmem:[#allocation3 + $0x18] sm:$0xff] }
 0x564   : > { %v2081_v19 = vpop.eup %2080 }
 0x565   : > { %1940 = vmatmul.mubr.msk.f32.vlgmr.msra.gmra.mxu1 %vm533_vm2, %v2081_v19  ;;  %v1243_v21 = vsel %vm533_vm2, %v2081_v19, 0.0 }
 0x566   : > { %1948 = vmatpush3.xpose.msk.msra.mxu1 %vm533_vm2, %v1401_v20  ;;  %1244 = vadd.xlane.f32.xlu1 %v1243_v21 }
 0x567   : > { %1949 = vmatprep.mubr.msk.f32.mxu1 %vm2318_vm1, %v2317_v0  ;;  %1957 = vmatprep.subr.mxu1 %v2317_v0 }
 0x569   : > { %1950 = vmatmul.mubr.msk.f32.vlgmr.msra.gmra.mxu1 %vm533_vm2, %v1399_v16 }
 0x56a   : > { %1959 = vmatprep.mubr.msk.f32.mxu1 %vm2318_vm1, %v2317_v0  ;;  %1958 = vmatpush3.msra.mxu1 %v1566_v42 }
 0x577   : > { %563 = vrot.lane.b32.xlu1 %v2585_v26, %s2321_s21 }
 0x586   : > { %v1150_v23 = vpop.f32.mrf.mxu1 }
 0x587   : > { %v1154_v24 = vadd.f32 %v1150_v23, %v1078_v22 }
 0x588   : > { %v1931_v25 = vpop.f32.mrf.mxu1 }
 0x589   : > { %1155 = vst.msk [vmem:[#allocation5] sm:$0xff] %vm380_vm0, %v1154_v24 }
 0x590   : > { %v1321_v43 = vld [vmem:[#allocation5] sm:$0xff] }
 0x5ef   : > { %v1245_v28 = vpop.xlane.xlu1 %1244 }
 0x5f0   : > { %2082 = vrcp.f32 %v1245_v28 }
 0x5f3   : > { %v564_v29 = vpop.permute.xlu1 %563 }
 0x5f4   : > { %567 = vst.msk [vmem:[#allocation4 + $0x18] sm:$0xff] %vm533_vm2, %v564_v29 }
 0x5fb   : > { %v1403_v26 = vld [vmem:[#allocation4 + $0x18] sm:$0xff] }
 0x5fd   : > { %v2083_v30 = vpop.eup %2082 }
 0x625   : > { %v1315_v31 = vpop.f32.mrf.mxu1 }
 0x626   : > { %v1320_v32 = vmul.f32 %v2083_v30, %v1315_v31 }
 0x627   : > { %v1941_v33 = vpop.f32.mrf.mxu1 }
 0x628   : > { %1945 = vmatmul.mubr.msk.f32.vlgmr.msra.gmra.mxu0 %vm533_vm2, %v1320_v32 }
 0x629   : > { %1953 = vmatpush3.msra.mxu0 %v1403_v26  ;;  %v1476_v34 = vpop.f32.mrf.mxu1  ;;  %1954 = vmatprep.mubr.msk.f32.mxu0 %vm2318_vm1, %v2317_v0 }
 0x62a   : > { %v1480_v35 = vsel %vm533_vm2, %v1476_v34, -inf }
 0x62b   : > { %1481 = vmax.xlane.f32.xlu0 %v1480_v35  ;;  %v1951_v36 = vpop.f32.mrf.mxu1 }
 0x6b4   : > { %v1482_v37 = vpop.xlane.xlu0 %1481 }
 0x6b5   : > { %v1483_v38 = vsub.f32 %v1476_v34, %v1482_v37 }
 0x6b7   : > { %v1484_v39 = vmul.f32 1.442695, %v1483_v38 }
 0x6b9   : > { %2084 = vpow2.f32 %v1484_v39 }
 0x6c6   : > { %v2085_v40 = vpop.eup %2084 }
 0x6c7   : > { %1955 = vmatmul.mubr.msk.f32.vlgmr.msra.gmra.mxu0 %vm533_vm2, %v2085_v40  ;;  %v1486_v41 = vsel %vm533_vm2, %v2085_v40, 0.0 }
 0x6c8   : > { %1487 = vadd.xlane.f32.xlu0 %v1486_v41 }
 0x6e8   : > { %v1393_v44 = vpop.f32.mrf.mxu0 }
 0x6e9   : > { %v1397_v45 = vadd.f32 %v1393_v44, %v1321_v43 }
 0x6ea   : > { %v1946_v0 = vpop.f32.mrf.mxu0 }
 0x6eb   : > { %1398 = vst.msk [vmem:[#allocation5] sm:$0xff] %vm380_vm0, %v1397_v45 }
 0x6f2   : > { %v1564_v51 = vld [vmem:[#allocation5] sm:$0xff] }
 0x751   : > { %v1488_v46 = vpop.xlane.xlu0 %1487 }
 0x752   : > { %2086 = vrcp.f32 %v1488_v46 }
 0x75f   : > { %v2087_v47 = vpop.eup %2086 }
 0x787   : > { %v1558_v48 = vpop.f32.mrf.mxu0 }
 0x788   : > { %v1563_v49 = vmul.f32 %v2087_v47, %v1558_v48 }
 0x789   : > { %v1956_v50 = vpop.f32.mrf.mxu0 }
 0x78a   : > { %1960 = vmatmul.mubr.msk.f32.vlgmr.msra.gmra.mxu1 %vm533_vm2, %v1563_v49 }
 0x84a   : > { %v1636_v52 = vpop.f32.mrf.mxu1 }
 0x84b   : > { %v1640_v53 = vadd.f32 %v1636_v52, %v1564_v51 }
 0x84c   : > { %v1961_v54 = vpop.f32.mrf.mxu1 }
 0x84d   : > { %1641 = vst.msk [vmem:[#allocation5] sm:$0xff] %vm380_vm0, %v1640_v53 }
 0x854   : > { %v1642_v56 = vld [vmem:[#allocation5] sm:$0xff] }
 0x855   : > { %v1650_v57 = vadd.f32 %v1825_v55, %v1642_v56 }
 0x857   : > { %1651 = vst.msk [vmem:[%s365_s30] sm:$0xff] %vm380_vm0, %v1650_v57 }
 0x858   : > { %2233 = shalt.err (!%p2230_p9)
}
 0x859   : > { %s2234_s17 = scalar_lea.hbm %s1665_s2, 128  ;;  %s2238_s16 = scalar_lea.hbm %s2715_s7, 256 }
 0x85a   : > { %p2235_p10 = scmp.ne.s32.totalorder %s1665_s2, %s2234_s17  ;;  %p2239_p13 = scmp.lt.s32.totalorder %s1665_s2, %s2715_s7 }
 0x85b   : > { %p2240_p4 = scmp.lt.s32.totalorder %s2238_s16, %s2234_s17 }
 0x85c   : > { %p2236_p12 = pnand %p2235_p10, %p2485_p2 }
 0x85d   : > { %p2241_p11 = por %p2240_p4, %p2239_p13 }
 0x85e   : > { %p2237_p6 = pneg %p2236_p12 }
 0x860   : > { %p2242_p1 = pnand %p2241_p11, %p2237_p6 }
 0x862   : > { %2245 = shalt.err (!%p2242_p1)
}
 0x863   : > { %1980 = dma.vmem_to_hbm [thread:$0]  (%p2485_p2), %s1668_s14, 128, %s1665_s2, %s1653_s8  }
 0x864 PF: > { %s1679_s12 = sand.u32 1, %s2288_s24   ;;  %p2732_p3 = scmp.ne.s32.totalorder %s2730_s15, 0 }
 0x865   : > { %p2733_p5 = scmp.ge.s32.totalorder %s2308_s29, 2  ;;  %s1680_s23 = scalar_lea.sflag [#allocation8], %s1679_s12 }
 0x867   : > { %p2000_p0 = pnand %p2733_p5, %p2732_p3 }
 0x869   : > { %p2001_p8 = pneg %p2000_p0 }
 0x86b   : > { %2283 = dma.done.wait (%p2001_p8), %s1680_s23, 128  }
 0x86c   : > { %2285 = vsyncadd (%p2001_p8), %s1680_s23, 4294967168  ;;  %s25_s29 = sadd.s32 1, %s2308_s29   ;;  %s2734_s24 = smov %s2292_s25 }
 0x86d   : > { %p22_p7 = scmp.ge.s32.totalorder %s25_s29, 4   ;;  %s2735_s25 = smov %s2296_s26 }
 0x86e   : > { %s2736_s26 = smov %s2490_s13  ;;  %s2737_s27 = smov %s2304_s28 }
 0x86f   : > { %s2738_s28 = smov %s2740_s22  ;;  %24 = sbr.rel (!%p22_p7) target bundleno = 13 (0xd), region = 132 }
 0x874   :  { %1685 = vsyncpa [#allocation7], 1 }
 0x875   :  { %1687 = vsyncpa [#allocation7 + $0x1], 1 }
 0x876   :  { %1688 = vsyncpa [#allocation10], 1 }
 0x877   :  { %1689 = vsyncpa [#allocation13], 1 }
 0x878   :  { %1690 = vsyncpa [#allocation8], 1 }
 0x879   :  { %1692 = vsyncpa [#allocation8 + $0x1], 1 }

</bundles_post_ra>
